<compile_context>
chip_gen: v5e
topology: v5e:2x2
jax: 0.10.0
libtpu: 0.0.40
codegen_flags: <defaults>
</compile_context>

<pallas_src>
import math

import jax
import jax.numpy as jnp
from jax import lax
from jax.experimental import pallas as pl
from jax.experimental.pallas import tpu as pltpu

# Module-level hyper-parameters (match the PyTorch source).
D_K = D_V = 64
D_MODEL = 64
N_HEADS = 5
D_FF = 256
N_LAYERS = 1
_SCALE = 1.0 / math.sqrt(D_K)
_LN_EPS = 1e-5  # nn.LayerNorm default


def _layer_norm(x):
    """LayerNorm over the last dim with identity affine (fresh nn.LayerNorm)."""
    mu = jnp.mean(x, axis=-1, keepdims=True)
    xc = x - mu
    var = jnp.mean(xc * xc, axis=-1, keepdims=True)
    return xc * lax.rsqrt(var + _LN_EPS)


def _decoder_layer_kernel(x_ref, wq_ref, wk_ref, wv_ref, wo_ref, w1_ref, w2_ref,
                          out_ref, attn_ref):
    # x_ref: (1, L, d_model); wq/wk/wv: (H, d_model, d_k); wo: (H, d_v, d_model)
    # w1: (d_model, d_ff); w2: (d_ff, d_model)
    # out_ref: (1, L, d_model); attn_ref: (1, H, L, L)
    n_heads = wq_ref.shape[0]

    x_in = x_ref[0]                        # native dtype (f32/bf16) for the MXU
    x32 = x_in.astype(jnp.float32)         # f32 copy for residual / LN math

    attn_out = jnp.zeros_like(x32)         # (L, d_model) f32 accumulator

    for h in range(n_heads):               # static unroll over heads
        # Per-head projections: (L, d_model) @ (d_model, d_k) -> (L, d_k), f32 acc.
        q = jnp.dot(x_in, wq_ref[h], preferred_element_type=jnp.float32)
        k = jnp.dot(x_in, wk_ref[h], preferred_element_type=jnp.float32)
        v = jnp.dot(x_in, wv_ref[h], preferred_element_type=jnp.float32)

        # scores = Q @ K^T / sqrt(d_k) -- contraction on last dims, no explicit
        # transpose of K (folds into MXU operand layout).
        s = lax.dot_general(q, k, (((1,), (1,)), ((), ())),
                            preferred_element_type=jnp.float32) * _SCALE

        # Decoder pad mask is all-False -> masked_fill_ is a no-op; skip it.

        # Numerically stable softmax over the key axis.
        m = jnp.max(s, axis=-1, keepdims=True)
        e = jnp.exp(s - m)
        denom = jnp.sum(e, axis=-1, keepdims=True)
        attn = e * pl.reciprocal(denom, approx=True)     # EUP vrcp (free slot)

        # context = attn @ V ; fold the output projection of this head.
        ctx = jnp.dot(attn, v, preferred_element_type=jnp.float32)   # (L, d_v)
        attn_out = attn_out + jnp.dot(ctx, wo_ref[h],
                                      preferred_element_type=jnp.float32)

        attn_ref[0, h] = attn.astype(attn_ref.dtype)

    # Multi-head attention residual + LayerNorm (fresh LN -> identity affine).
    h1 = _layer_norm(x32 + attn_out)

    # Position-wise FFN: Linear(64->256) -> ReLU -> Linear(256->64).
    f1 = jnp.maximum(jnp.dot(h1, w1_ref[...],
                             preferred_element_type=jnp.float32), 0.0)
    f2 = jnp.dot(f1, w2_ref[...], preferred_element_type=jnp.float32)

    out_ref[0] = _layer_norm(h1 + f2).astype(out_ref.dtype)


def _decoder_layer(x, wq, wk, wv, wo, w1, w2):
    """One DecoderLayer. x: [B, L, d_model] -> (out [B, L, d_model], attn [B, H, L, L])."""
    B, L, D = x.shape
    H, _, dk = wq.shape
    dv = wv.shape[2]
    dff = w1.shape[1]

    out, attn = pl.pallas_call(
        _decoder_layer_kernel,
        out_shape=(
            jax.ShapeDtypeStruct((B, L, D), x.dtype),
            jax.ShapeDtypeStruct((B, H, L, L), jnp.float32),
        ),
        grid_spec=pltpu.PrefetchScalarGridSpec(
            num_scalar_prefetch=0,
            grid=(B,),
            in_specs=[
                pl.BlockSpec((1, L, D), lambda b: (b, 0, 0)),
                # Weights: constant index_map -> stay resident in VMEM across
                # grid steps (no re-DMA).
                pl.BlockSpec((H, D, dk), lambda b: (0, 0, 0)),
                pl.BlockSpec((H, D, dk), lambda b: (0, 0, 0)),
                pl.BlockSpec((H, D, dv), lambda b: (0, 0, 0)),
                pl.BlockSpec((H, dv, D), lambda b: (0, 0, 0)),
                pl.BlockSpec((D, dff), lambda b: (0, 0)),
                pl.BlockSpec((dff, D), lambda b: (0, 0)),
            ],
            out_specs=[
                pl.BlockSpec((1, L, D), lambda b: (b, 0, 0)),
                pl.BlockSpec((1, H, L, L), lambda b: (b, 0, 0, 0)),
            ],
        ),
        compiler_params=pltpu.CompilerParams(
            dimension_semantics=("parallel",),
            vmem_limit_bytes=32 * 1024 * 1024,
        ),
    )(x, wq, wk, wv, wo, w1, w2)
    return out, attn


def _positional_encoding(max_len, d_model):
    """Matches PositionalEncoding.pe (before unsqueeze/transpose)."""
    pos = jnp.arange(max_len, dtype=jnp.float32)[:, None]
    div = jnp.exp(jnp.arange(0, d_model, 2, dtype=jnp.float32)
                  * (-math.log(10000.0) / d_model))
    pe = jnp.zeros((max_len, d_model), dtype=jnp.float32)
    pe = pe.at[:, 0::2].set(jnp.sin(pos * div))
    pe = pe.at[:, 1::2].set(jnp.cos(pos * div))
    return pe


def decoder_forward(dec_inputs, layer_params):
    """Pallas equivalent of Decoder.forward.

    dec_inputs: [B, tgt_len, d_model]
    layer_params: list of (wq, wk, wv, wo, w1, w2) per layer, with
        wq/wk/wv: [n_heads, d_model, d_k], wo: [n_heads, d_v, d_model],
        w1: [d_model, d_ff], w2: [d_ff, d_model].
    Returns (dec_outputs [B, tgt_len, d_model], [attn [B, n_heads, L, L], ...]).
    """
    B, L, D = dec_inputs.shape
    pe = _positional_encoding(L, D).astype(dec_inputs.dtype)
    # TODO(synk): PositionalEncoding's Dropout(p=0.1) is treated as identity
    # (inference mode); training-mode stochastic dropout is not implemented.
    x = dec_inputs + pe[None, :, :]

    attns = []
    for (wq, wk, wv, wo, w1, w2) in layer_params:
        x, attn = _decoder_layer(x, wq, wk, wv, wo, w1, w2)
        attns.append(attn)
    return x, attns


# ----------------------------- reference (plain JAX) -------------------------

def _reference_decoder(dec_inputs, layer_params):
    B, L, D = dec_inputs.shape
    pe = _positional_encoding(L, D)
    x = dec_inputs.astype(jnp.float32) + pe[None, :, :]
    attns = []
    for (wq, wk, wv, wo, w1, w2) in layer_params:
        Q = jnp.einsum("bld,hdk->bhlk", x, wq)
        K = jnp.einsum("bld,hdk->bhlk", x, wk)
        V = jnp.einsum("bld,hdk->bhlk", x, wv)
        scores = jnp.einsum("bhqd,bhkd->bhqk", Q, K) * _SCALE
        # all-False pad mask -> no masking
        attn = jax.nn.softmax(scores, axis=-1)
        ctx = jnp.einsum("bhqk,bhkd->bhqd", attn, V)
        proj = jnp.einsum("bhqd,hdm->bqm", ctx, wo)
        h1 = _layer_norm(x + proj)
        f = jnp.maximum(h1 @ w1, 0.0) @ w2
        x = _layer_norm(h1 + f)
        attns.append(attn)
    return x, attns


if __name__ == "__main__":
    key = jax.random.PRNGKey(0)
    B, tgt_len = 2, 16

    keys = jax.random.split(key, 1 + 6 * N_LAYERS)
    dec_inputs = jax.random.normal(keys[0], (B, tgt_len, D_MODEL),
                                   dtype=jnp.float32)

    layer_params = []
    for layer in range(N_LAYERS):
        kq, kk, kv, ko, k1, k2 = keys[1 + 6 * layer: 1 + 6 * (layer + 1)]
        wq = jax.random.normal(kq, (N_HEADS, D_MODEL, D_K), jnp.float32) / math.sqrt(D_MODEL)
        wk = jax.random.normal(kk, (N_HEADS, D_MODEL, D_K), jnp.float32) / math.sqrt(D_MODEL)
        wv = jax.random.normal(kv, (N_HEADS, D_MODEL, D_V), jnp.float32) / math.sqrt(D_MODEL)
        wo = jax.random.normal(ko, (N_HEADS, D_V, D_MODEL), jnp.float32) / math.sqrt(N_HEADS * D_V)
        w1 = jax.random.normal(k1, (D_MODEL, D_FF), jnp.float32) / math.sqrt(D_MODEL)
        w2 = jax.random.normal(k2, (D_FF, D_MODEL), jnp.float32) / math.sqrt(D_FF)
        layer_params.append((wq, wk, wv, wo, w1, w2))

    dec_out, dec_attns = decoder_forward(dec_inputs, layer_params)
    jax.block_until_ready((dec_out, dec_attns))

    ref_out, ref_attns = _reference_decoder(dec_inputs, layer_params)

    assert jnp.allclose(dec_out, ref_out, atol=5e-3, rtol=5e-3), (
        float(jnp.max(jnp.abs(dec_out - ref_out))))
    for a, r in zip(dec_attns, ref_attns):
        assert jnp.allclose(a, r, atol=5e-3, rtol=5e-3), (
            float(jnp.max(jnp.abs(a - r))))

    print("KERNEL_OK")
</pallas_src>

<mosaic_0001>
module attributes {stable_mosaic.version = 11 : i64} {
  func.func @_decoder_layer_kernel(%arg0: i32, %arg1: memref<1x16x64xf32, #tpu.memory_space<vmem>>, %arg2: memref<5x64x64xf32, #tpu.memory_space<vmem>>, %arg3: memref<5x64x64xf32, #tpu.memory_space<vmem>>, %arg4: memref<5x64x64xf32, #tpu.memory_space<vmem>>, %arg5: memref<5x64x64xf32, #tpu.memory_space<vmem>>, %arg6: memref<64x256xf32, #tpu.memory_space<vmem>>, %arg7: memref<256x64xf32, #tpu.memory_space<vmem>>, %arg8: memref<1x16x64xf32, #tpu.memory_space<vmem>>, %arg9: memref<1x5x16x16xf32, #tpu.memory_space<vmem>>) attributes {dimension_semantics = [#tpu.dimension_semantics<parallel>], iteration_bounds = array<i64: 2>, scalar_prefetch = 0 : i64, scratch_operands = 0 : i64, tpu.core_type = #tpu.core_type<tc>, window_params = [{transform_indices = @transform_0, window_bounds = array<i64: 1, 16, 64>}, {pipeline_mode = #tpu.pipeline_mode<synchronous>, transform_indices = @transform_1, window_bounds = array<i64: 5, 64, 64>}, {pipeline_mode = #tpu.pipeline_mode<synchronous>, transform_indices = @transform_2, window_bounds = array<i64: 5, 64, 64>}, {pipeline_mode = #tpu.pipeline_mode<synchronous>, transform_indices = @transform_3, window_bounds = array<i64: 5, 64, 64>}, {pipeline_mode = #tpu.pipeline_mode<synchronous>, transform_indices = @transform_4, window_bounds = array<i64: 5, 64, 64>}, {pipeline_mode = #tpu.pipeline_mode<synchronous>, transform_indices = @transform_5, window_bounds = array<i64: 64, 256>}, {pipeline_mode = #tpu.pipeline_mode<synchronous>, transform_indices = @transform_6, window_bounds = array<i64: 256, 64>}, {transform_indices = @transform_7, window_bounds = array<i64: 1, 16, 64>}, {transform_indices = @transform_8, window_bounds = array<i64: 1, 5, 16, 16>}]} {
    %c0 = arith.constant 0 : index
    %c0_0 = arith.constant 0 : index
    %c0_1 = arith.constant 0 : index
    %0 = vector.load %arg1[%c0, %c0_0, %c0_1] : memref<1x16x64xf32, #tpu.memory_space<vmem>>, vector<1x16x64xf32>
    %1 = vector.shape_cast %0 : vector<1x16x64xf32> to vector<16x64xf32>
    %cst = arith.constant 0.000000e+00 : f32
    %2 = vector.broadcast %cst : f32 to vector<16x64xf32>
    %c0_2 = arith.constant 0 : index
    %c0_3 = arith.constant 0 : index
    %c0_4 = arith.constant 0 : index
    %3 = vector.load %arg2[%c0_2, %c0_3, %c0_4] : memref<5x64x64xf32, #tpu.memory_space<vmem>>, vector<1x64x64xf32>
    %4 = vector.shape_cast %3 : vector<1x64x64xf32> to vector<64x64xf32>
    %cst_5 = arith.constant dense<0.000000e+00> : vector<16x64xf32>
    %5 = tpu.matmul %1, %4, %cst_5 {dimension_numbers = #tpu.dot_dimension_numbers<[1], [0], [0], [1], [0, 0, 1, 1], [], []>} : vector<16x64xf32>, vector<64x64xf32>, vector<16x64xf32> -> vector<16x64xf32>
    %c0_6 = arith.constant 0 : index
    %c0_7 = arith.constant 0 : index
    %c0_8 = arith.constant 0 : index
    %6 = vector.load %arg3[%c0_6, %c0_7, %c0_8] : memref<5x64x64xf32, #tpu.memory_space<vmem>>, vector<1x64x64xf32>
    %7 = vector.shape_cast %6 : vector<1x64x64xf32> to vector<64x64xf32>
    %cst_9 = arith.constant dense<0.000000e+00> : vector<16x64xf32>
    %8 = tpu.matmul %1, %7, %cst_9 {dimension_numbers = #tpu.dot_dimension_numbers<[1], [0], [0], [1], [0, 0, 1, 1], [], []>} : vector<16x64xf32>, vector<64x64xf32>, vector<16x64xf32> -> vector<16x64xf32>
    %c0_10 = arith.constant 0 : index
    %c0_11 = arith.constant 0 : index
    %c0_12 = arith.constant 0 : index
    %9 = vector.load %arg4[%c0_10, %c0_11, %c0_12] : memref<5x64x64xf32, #tpu.memory_space<vmem>>, vector<1x64x64xf32>
    %10 = vector.shape_cast %9 : vector<1x64x64xf32> to vector<64x64xf32>
    %cst_13 = arith.constant dense<0.000000e+00> : vector<16x64xf32>
    %11 = tpu.matmul %1, %10, %cst_13 {dimension_numbers = #tpu.dot_dimension_numbers<[1], [0], [0], [1], [0, 0, 1, 1], [], []>} : vector<16x64xf32>, vector<64x64xf32>, vector<16x64xf32> -> vector<16x64xf32>
    %cst_14 = arith.constant dense<0.000000e+00> : vector<16x16xf32>
    %12 = tpu.matmul %5, %8, %cst_14 {dimension_numbers = #tpu.dot_dimension_numbers<[1], [1], [0], [0], [0, 0, 1, 0], [], []>} : vector<16x64xf32>, vector<16x64xf32>, vector<16x16xf32> -> vector<16x16xf32>
    %cst_15 = arith.constant 1.250000e-01 : f32
    %13 = vector.broadcast %cst_15 : f32 to vector<16x16xf32>
    %14 = arith.mulf %12, %13 : vector<16x16xf32>
    %cst_16 = arith.constant dense<0xFF800000> : vector<16xf32>
    %15 = vector.multi_reduction <maximumf>, %14, %cst_16 [1] : vector<16x16xf32> to vector<16xf32>
    %16 = vector.shape_cast %15 : vector<16xf32> to vector<16x1xf32>
    %17 = vector.broadcast %16 : vector<16x1xf32> to vector<16x16xf32>
    %18 = arith.subf %14, %17 : vector<16x16xf32>
    %19 = math.exp %18 : vector<16x16xf32>
    %cst_17 = arith.constant dense<0.000000e+00> : vector<16xf32>
    %20 = vector.multi_reduction <add>, %19, %cst_17 [1] : vector<16x16xf32> to vector<16xf32>
    %21 = vector.shape_cast %20 : vector<16xf32> to vector<16x1xf32>
    %22 = tpu.reciprocal %21 {approx = true} : vector<16x1xf32> -> vector<16x1xf32>
    %23 = vector.broadcast %22 : vector<16x1xf32> to vector<16x16xf32>
    %24 = arith.mulf %19, %23 : vector<16x16xf32>
    %cst_18 = arith.constant dense<0.000000e+00> : vector<16x64xf32>
    %25 = tpu.matmul %24, %11, %cst_18 {dimension_numbers = #tpu.dot_dimension_numbers<[1], [0], [0], [1], [0, 0, 1, 1], [], []>} : vector<16x16xf32>, vector<16x64xf32>, vector<16x64xf32> -> vector<16x64xf32>
    %c0_19 = arith.constant 0 : index
    %c0_20 = arith.constant 0 : index
    %c0_21 = arith.constant 0 : index
    %26 = vector.load %arg5[%c0_19, %c0_20, %c0_21] : memref<5x64x64xf32, #tpu.memory_space<vmem>>, vector<1x64x64xf32>
    %27 = vector.shape_cast %26 : vector<1x64x64xf32> to vector<64x64xf32>
    %cst_22 = arith.constant dense<0.000000e+00> : vector<16x64xf32>
    %28 = tpu.matmul %25, %27, %cst_22 {dimension_numbers = #tpu.dot_dimension_numbers<[1], [0], [0], [1], [0, 0, 1, 1], [], []>} : vector<16x64xf32>, vector<64x64xf32>, vector<16x64xf32> -> vector<16x64xf32>
    %29 = arith.addf %2, %28 : vector<16x64xf32>
    %c0_23 = arith.constant 0 : index
    %c0_24 = arith.constant 0 : index
    %c0_25 = arith.constant 0 : index
    %c0_26 = arith.constant 0 : index
    %30 = vector.load %arg9[%c0_23, %c0_24, %c0_25, %c0_26] : memref<1x5x16x16xf32, #tpu.memory_space<vmem>>, vector<1x1x16x16xf32>
    %31 = vector.shape_cast %30 : vector<1x1x16x16xf32> to vector<16x16xf32>
    %32 = vector.shape_cast %24 : vector<16x16xf32> to vector<1x1x16x16xf32>
    tpu.vector_store %arg9[%c0_23, %c0_24, %c0_25, %c0_26], %32 {strides = array<i32>} : memref<1x5x16x16xf32, #tpu.memory_space<vmem>>, vector<1x1x16x16xf32>,
    %c1 = arith.constant 1 : index
    %c0_27 = arith.constant 0 : index
    %c0_28 = arith.constant 0 : index
    %33 = vector.load %arg2[%c1, %c0_27, %c0_28] : memref<5x64x64xf32, #tpu.memory_space<vmem>>, vector<1x64x64xf32>
    %34 = vector.shape_cast %33 : vector<1x64x64xf32> to vector<64x64xf32>
    %cst_29 = arith.constant dense<0.000000e+00> : vector<16x64xf32>
    %35 = tpu.matmul %1, %34, %cst_29 {dimension_numbers = #tpu.dot_dimension_numbers<[1], [0], [0], [1], [0, 0, 1, 1], [], []>} : vector<16x64xf32>, vector<64x64xf32>, vector<16x64xf32> -> vector<16x64xf32>
    %c1_30 = arith.constant 1 : index
    %c0_31 = arith.constant 0 : index
    %c0_32 = arith.constant 0 : index
    %36 = vector.load %arg3[%c1_30, %c0_31, %c0_32] : memref<5x64x64xf32, #tpu.memory_space<vmem>>, vector<1x64x64xf32>
    %37 = vector.shape_cast %36 : vector<1x64x64xf32> to vector<64x64xf32>
    %cst_33 = arith.constant dense<0.000000e+00> : vector<16x64xf32>
    %38 = tpu.matmul %1, %37, %cst_33 {dimension_numbers = #tpu.dot_dimension_numbers<[1], [0], [0], [1], [0, 0, 1, 1], [], []>} : vector<16x64xf32>, vector<64x64xf32>, vector<16x64xf32> -> vector<16x64xf32>
    %c1_34 = arith.constant 1 : index
    %c0_35 = arith.constant 0 : index
    %c0_36 = arith.constant 0 : index
    %39 = vector.load %arg4[%c1_34, %c0_35, %c0_36] : memref<5x64x64xf32, #tpu.memory_space<vmem>>, vector<1x64x64xf32>
    %40 = vector.shape_cast %39 : vector<1x64x64xf32> to vector<64x64xf32>
    %cst_37 = arith.constant dense<0.000000e+00> : vector<16x64xf32>
    %41 = tpu.matmul %1, %40, %cst_37 {dimension_numbers = #tpu.dot_dimension_numbers<[1], [0], [0], [1], [0, 0, 1, 1], [], []>} : vector<16x64xf32>, vector<64x64xf32>, vector<16x64xf32> -> vector<16x64xf32>
    %cst_38 = arith.constant dense<0.000000e+00> : vector<16x16xf32>
    %42 = tpu.matmul %35, %38, %cst_38 {dimension_numbers = #tpu.dot_dimension_numbers<[1], [1], [0], [0], [0, 0, 1, 0], [], []>} : vector<16x64xf32>, vector<16x64xf32>, vector<16x16xf32> -> vector<16x16xf32>
    %cst_39 = arith.constant 1.250000e-01 : f32
    %43 = vector.broadcast %cst_39 : f32 to vector<16x16xf32>
    %44 = arith.mulf %42, %43 : vector<16x16xf32>
    %cst_40 = arith.constant dense<0xFF800000> : vector<16xf32>
    %45 = vector.multi_reduction <maximumf>, %44, %cst_40 [1] : vector<16x16xf32> to vector<16xf32>
    %46 = vector.shape_cast %45 : vector<16xf32> to vector<16x1xf32>
    %47 = vector.broadcast %46 : vector<16x1xf32> to vector<16x16xf32>
    %48 = arith.subf %44, %47 : vector<16x16xf32>
    %49 = math.exp %48 : vector<16x16xf32>
    %cst_41 = arith.constant dense<0.000000e+00> : vector<16xf32>
    %50 = vector.multi_reduction <add>, %49, %cst_41 [1] : vector<16x16xf32> to vector<16xf32>
    %51 = vector.shape_cast %50 : vector<16xf32> to vector<16x1xf32>
    %52 = tpu.reciprocal %51 {approx = true} : vector<16x1xf32> -> vector<16x1xf32>
    %53 = vector.broadcast %52 : vector<16x1xf32> to vector<16x16xf32>
    %54 = arith.mulf %49, %53 : vector<16x16xf32>
    %cst_42 = arith.constant dense<0.000000e+00> : vector<16x64xf32>
    %55 = tpu.matmul %54, %41, %cst_42 {dimension_numbers = #tpu.dot_dimension_numbers<[1], [0], [0], [1], [0, 0, 1, 1], [], []>} : vector<16x16xf32>, vector<16x64xf32>, vector<16x64xf32> -> vector<16x64xf32>
    %c1_43 = arith.constant 1 : index
    %c0_44 = arith.constant 0 : index
    %c0_45 = arith.constant 0 : index
    %56 = vector.load %arg5[%c1_43, %c0_44, %c0_45] : memref<5x64x64xf32, #tpu.memory_space<vmem>>, vector<1x64x64xf32>
    %57 = vector.shape_cast %56 : vector<1x64x64xf32> to vector<64x64xf32>
    %cst_46 = arith.constant dense<0.000000e+00> : vector<16x64xf32>
    %58 = tpu.matmul %55, %57, %cst_46 {dimension_numbers = #tpu.dot_dimension_numbers<[1], [0], [0], [1], [0, 0, 1, 1], [], []>} : vector<16x64xf32>, vector<64x64xf32>, vector<16x64xf32> -> vector<16x64xf32>
    %59 = arith.addf %29, %58 : vector<16x64xf32>
    %c0_47 = arith.constant 0 : index
    %c1_48 = arith.constant 1 : index
    %c0_49 = arith.constant 0 : index
    %c0_50 = arith.constant 0 : index
    %60 = vector.load %arg9[%c0_47, %c1_48, %c0_49, %c0_50] : memref<1x5x16x16xf32, #tpu.memory_space<vmem>>, vector<1x1x16x16xf32>
    %61 = vector.shape_cast %60 : vector<1x1x16x16xf32> to vector<16x16xf32>
    %62 = vector.shape_cast %54 : vector<16x16xf32> to vector<1x1x16x16xf32>
    tpu.vector_store %arg9[%c0_47, %c1_48, %c0_49, %c0_50], %62 {strides = array<i32>} : memref<1x5x16x16xf32, #tpu.memory_space<vmem>>, vector<1x1x16x16xf32>,
    %c2 = arith.constant 2 : index
    %c0_51 = arith.constant 0 : index
    %c0_52 = arith.constant 0 : index
    %63 = vector.load %arg2[%c2, %c0_51, %c0_52] : memref<5x64x64xf32, #tpu.memory_space<vmem>>, vector<1x64x64xf32>
    %64 = vector.shape_cast %63 : vector<1x64x64xf32> to vector<64x64xf32>
    %cst_53 = arith.constant dense<0.000000e+00> : vector<16x64xf32>
    %65 = tpu.matmul %1, %64, %cst_53 {dimension_numbers = #tpu.dot_dimension_numbers<[1], [0], [0], [1], [0, 0, 1, 1], [], []>} : vector<16x64xf32>, vector<64x64xf32>, vector<16x64xf32> -> vector<16x64xf32>
    %c2_54 = arith.constant 2 : index
    %c0_55 = arith.constant 0 : index
    %c0_56 = arith.constant 0 : index
    %66 = vector.load %arg3[%c2_54, %c0_55, %c0_56] : memref<5x64x64xf32, #tpu.memory_space<vmem>>, vector<1x64x64xf32>
    %67 = vector.shape_cast %66 : vector<1x64x64xf32> to vector<64x64xf32>
    %cst_57 = arith.constant dense<0.000000e+00> : vector<16x64xf32>
    %68 = tpu.matmul %1, %67, %cst_57 {dimension_numbers = #tpu.dot_dimension_numbers<[1], [0], [0], [1], [0, 0, 1, 1], [], []>} : vector<16x64xf32>, vector<64x64xf32>, vector<16x64xf32> -> vector<16x64xf32>
    %c2_58 = arith.constant 2 : index
    %c0_59 = arith.constant 0 : index
    %c0_60 = arith.constant 0 : index
    %69 = vector.load %arg4[%c2_58, %c0_59, %c0_60] : memref<5x64x64xf32, #tpu.memory_space<vmem>>, vector<1x64x64xf32>
    %70 = vector.shape_cast %69 : vector<1x64x64xf32> to vector<64x64xf32>
    %cst_61 = arith.constant dense<0.000000e+00> : vector<16x64xf32>
    %71 = tpu.matmul %1, %70, %cst_61 {dimension_numbers = #tpu.dot_dimension_numbers<[1], [0], [0], [1], [0, 0, 1, 1], [], []>} : vector<16x64xf32>, vector<64x64xf32>, vector<16x64xf32> -> vector<16x64xf32>
    %cst_62 = arith.constant dense<0.000000e+00> : vector<16x16xf32>
    %72 = tpu.matmul %65, %68, %cst_62 {dimension_numbers = #tpu.dot_dimension_numbers<[1], [1], [0], [0], [0, 0, 1, 0], [], []>} : vector<16x64xf32>, vector<16x64xf32>, vector<16x16xf32> -> vector<16x16xf32>
    %cst_63 = arith.constant 1.250000e-01 : f32
    %73 = vector.broadcast %cst_63 : f32 to vector<16x16xf32>
    %74 = arith.mulf %72, %73 : vector<16x16xf32>
    %cst_64 = arith.constant dense<0xFF800000> : vector<16xf32>
    %75 = vector.multi_reduction <maximumf>, %74, %cst_64 [1] : vector<16x16xf32> to vector<16xf32>
    %76 = vector.shape_cast %75 : vector<16xf32> to vector<16x1xf32>
    %77 = vector.broadcast %76 : vector<16x1xf32> to vector<16x16xf32>
    %78 = arith.subf %74, %77 : vector<16x16xf32>
    %79 = math.exp %78 : vector<16x16xf32>
    %cst_65 = arith.constant dense<0.000000e+00> : vector<16xf32>
    %80 = vector.multi_reduction <add>, %79, %cst_65 [1] : vector<16x16xf32> to vector<16xf32>
    %81 = vector.shape_cast %80 : vector<16xf32> to vector<16x1xf32>
    %82 = tpu.reciprocal %81 {approx = true} : vector<16x1xf32> -> vector<16x1xf32>
    %83 = vector.broadcast %82 : vector<16x1xf32> to vector<16x16xf32>
    %84 = arith.mulf %79, %83 : vector<16x16xf32>
    %cst_66 = arith.constant dense<0.000000e+00> : vector<16x64xf32>
    %85 = tpu.matmul %84, %71, %cst_66 {dimension_numbers = #tpu.dot_dimension_numbers<[1], [0], [0], [1], [0, 0, 1, 1], [], []>} : vector<16x16xf32>, vector<16x64xf32>, vector<16x64xf32> -> vector<16x64xf32>
    %c2_67 = arith.constant 2 : index
    %c0_68 = arith.constant 0 : index
    %c0_69 = arith.constant 0 : index
    %86 = vector.load %arg5[%c2_67, %c0_68, %c0_69] : memref<5x64x64xf32, #tpu.memory_space<vmem>>, vector<1x64x64xf32>
    %87 = vector.shape_cast %86 : vector<1x64x64xf32> to vector<64x64xf32>
    %cst_70 = arith.constant dense<0.000000e+00> : vector<16x64xf32>
    %88 = tpu.matmul %85, %87, %cst_70 {dimension_numbers = #tpu.dot_dimension_numbers<[1], [0], [0], [1], [0, 0, 1, 1], [], []>} : vector<16x64xf32>, vector<64x64xf32>, vector<16x64xf32> -> vector<16x64xf32>
    %89 = arith.addf %59, %88 : vector<16x64xf32>
    %c0_71 = arith.constant 0 : index
    %c2_72 = arith.constant 2 : index
    %c0_73 = arith.constant 0 : index
    %c0_74 = arith.constant 0 : index
    %90 = vector.load %arg9[%c0_71, %c2_72, %c0_73, %c0_74] : memref<1x5x16x16xf32, #tpu.memory_space<vmem>>, vector<1x1x16x16xf32>
    %91 = vector.shape_cast %90 : vector<1x1x16x16xf32> to vector<16x16xf32>
    %92 = vector.shape_cast %84 : vector<16x16xf32> to vector<1x1x16x16xf32>
    tpu.vector_store %arg9[%c0_71, %c2_72, %c0_73, %c0_74], %92 {strides = array<i32>} : memref<1x5x16x16xf32, #tpu.memory_space<vmem>>, vector<1x1x16x16xf32>,
    %c3 = arith.constant 3 : index
    %c0_75 = arith.constant 0 : index
    %c0_76 = arith.constant 0 : index
    %93 = vector.load %arg2[%c3, %c0_75, %c0_76] : memref<5x64x64xf32, #tpu.memory_space<vmem>>, vector<1x64x64xf32>
    %94 = vector.shape_cast %93 : vector<1x64x64xf32> to vector<64x64xf32>
    %cst_77 = arith.constant dense<0.000000e+00> : vector<16x64xf32>
    %95 = tpu.matmul %1, %94, %cst_77 {dimension_numbers = #tpu.dot_dimension_numbers<[1], [0], [0], [1], [0, 0, 1, 1], [], []>} : vector<16x64xf32>, vector<64x64xf32>, vector<16x64xf32> -> vector<16x64xf32>
    %c3_78 = arith.constant 3 : index
    %c0_79 = arith.constant 0 : index
    %c0_80 = arith.constant 0 : index
    %96 = vector.load %arg3[%c3_78, %c0_79, %c0_80] : memref<5x64x64xf32, #tpu.memory_space<vmem>>, vector<1x64x64xf32>
    %97 = vector.shape_cast %96 : vector<1x64x64xf32> to vector<64x64xf32>
    %cst_81 = arith.constant dense<0.000000e+00> : vector<16x64xf32>
    %98 = tpu.matmul %1, %97, %cst_81 {dimension_numbers = #tpu.dot_dimension_numbers<[1], [0], [0], [1], [0, 0, 1, 1], [], []>} : vector<16x64xf32>, vector<64x64xf32>, vector<16x64xf32> -> vector<16x64xf32>
    %c3_82 = arith.constant 3 : index
    %c0_83 = arith.constant 0 : index
    %c0_84 = arith.constant 0 : index
    %99 = vector.load %arg4[%c3_82, %c0_83, %c0_84] : memref<5x64x64xf32, #tpu.memory_space<vmem>>, vector<1x64x64xf32>
    %100 = vector.shape_cast %99 : vector<1x64x64xf32> to vector<64x64xf32>
    %cst_85 = arith.constant dense<0.000000e+00> : vector<16x64xf32>
    %101 = tpu.matmul %1, %100, %cst_85 {dimension_numbers = #tpu.dot_dimension_numbers<[1], [0], [0], [1], [0, 0, 1, 1], [], []>} : vector<16x64xf32>, vector<64x64xf32>, vector<16x64xf32> -> vector<16x64xf32>
    %cst_86 = arith.constant dense<0.000000e+00> : vector<16x16xf32>
    %102 = tpu.matmul %95, %98, %cst_86 {dimension_numbers = #tpu.dot_dimension_numbers<[1], [1], [0], [0], [0, 0, 1, 0], [], []>} : vector<16x64xf32>, vector<16x64xf32>, vector<16x16xf32> -> vector<16x16xf32>
    %cst_87 = arith.constant 1.250000e-01 : f32
    %103 = vector.broadcast %cst_87 : f32 to vector<16x16xf32>
    %104 = arith.mulf %102, %103 : vector<16x16xf32>
    %cst_88 = arith.constant dense<0xFF800000> : vector<16xf32>
    %105 = vector.multi_reduction <maximumf>, %104, %cst_88 [1] : vector<16x16xf32> to vector<16xf32>
    %106 = vector.shape_cast %105 : vector<16xf32> to vector<16x1xf32>
    %107 = vector.broadcast %106 : vector<16x1xf32> to vector<16x16xf32>
    %108 = arith.subf %104, %107 : vector<16x16xf32>
    %109 = math.exp %108 : vector<16x16xf32>
    %cst_89 = arith.constant dense<0.000000e+00> : vector<16xf32>
    %110 = vector.multi_reduction <add>, %109, %cst_89 [1] : vector<16x16xf32> to vector<16xf32>
    %111 = vector.shape_cast %110 : vector<16xf32> to vector<16x1xf32>
    %112 = tpu.reciprocal %111 {approx = true} : vector<16x1xf32> -> vector<16x1xf32>
    %113 = vector.broadcast %112 : vector<16x1xf32> to vector<16x16xf32>
    %114 = arith.mulf %109, %113 : vector<16x16xf32>
    %cst_90 = arith.constant dense<0.000000e+00> : vector<16x64xf32>
    %115 = tpu.matmul %114, %101, %cst_90 {dimension_numbers = #tpu.dot_dimension_numbers<[1], [0], [0], [1], [0, 0, 1, 1], [], []>} : vector<16x16xf32>, vector<16x64xf32>, vector<16x64xf32> -> vector<16x64xf32>
    %c3_91 = arith.constant 3 : index
    %c0_92 = arith.constant 0 : index
    %c0_93 = arith.constant 0 : index
    %116 = vector.load %arg5[%c3_91, %c0_92, %c0_93] : memref<5x64x64xf32, #tpu.memory_space<vmem>>, vector<1x64x64xf32>
    %117 = vector.shape_cast %116 : vector<1x64x64xf32> to vector<64x64xf32>
    %cst_94 = arith.constant dense<0.000000e+00> : vector<16x64xf32>
    %118 = tpu.matmul %115, %117, %cst_94 {dimension_numbers = #tpu.dot_dimension_numbers<[1], [0], [0], [1], [0, 0, 1, 1], [], []>} : vector<16x64xf32>, vector<64x64xf32>, vector<16x64xf32> -> vector<16x64xf32>
    %119 = arith.addf %89, %118 : vector<16x64xf32>
    %c0_95 = arith.constant 0 : index
    %c3_96 = arith.constant 3 : index
    %c0_97 = arith.constant 0 : index
    %c0_98 = arith.constant 0 : index
    %120 = vector.load %arg9[%c0_95, %c3_96, %c0_97, %c0_98] : memref<1x5x16x16xf32, #tpu.memory_space<vmem>>, vector<1x1x16x16xf32>
    %121 = vector.shape_cast %120 : vector<1x1x16x16xf32> to vector<16x16xf32>
    %122 = vector.shape_cast %114 : vector<16x16xf32> to vector<1x1x16x16xf32>
    tpu.vector_store %arg9[%c0_95, %c3_96, %c0_97, %c0_98], %122 {strides = array<i32>} : memref<1x5x16x16xf32, #tpu.memory_space<vmem>>, vector<1x1x16x16xf32>,
    %c4 = arith.constant 4 : index
    %c0_99 = arith.constant 0 : index
    %c0_100 = arith.constant 0 : index
    %123 = vector.load %arg2[%c4, %c0_99, %c0_100] : memref<5x64x64xf32, #tpu.memory_space<vmem>>, vector<1x64x64xf32>
    %124 = vector.shape_cast %123 : vector<1x64x64xf32> to vector<64x64xf32>
    %cst_101 = arith.constant dense<0.000000e+00> : vector<16x64xf32>
    %125 = tpu.matmul %1, %124, %cst_101 {dimension_numbers = #tpu.dot_dimension_numbers<[1], [0], [0], [1], [0, 0, 1, 1], [], []>} : vector<16x64xf32>, vector<64x64xf32>, vector<16x64xf32> -> vector<16x64xf32>
    %c4_102 = arith.constant 4 : index
    %c0_103 = arith.constant 0 : index
    %c0_104 = arith.constant 0 : index
    %126 = vector.load %arg3[%c4_102, %c0_103, %c0_104] : memref<5x64x64xf32, #tpu.memory_space<vmem>>, vector<1x64x64xf32>
    %127 = vector.shape_cast %126 : vector<1x64x64xf32> to vector<64x64xf32>
    %cst_105 = arith.constant dense<0.000000e+00> : vector<16x64xf32>
    %128 = tpu.matmul %1, %127, %cst_105 {dimension_numbers = #tpu.dot_dimension_numbers<[1], [0], [0], [1], [0, 0, 1, 1], [], []>} : vector<16x64xf32>, vector<64x64xf32>, vector<16x64xf32> -> vector<16x64xf32>
    %c4_106 = arith.constant 4 : index
    %c0_107 = arith.constant 0 : index
    %c0_108 = arith.constant 0 : index
    %129 = vector.load %arg4[%c4_106, %c0_107, %c0_108] : memref<5x64x64xf32, #tpu.memory_space<vmem>>, vector<1x64x64xf32>
    %130 = vector.shape_cast %129 : vector<1x64x64xf32> to vector<64x64xf32>
    %cst_109 = arith.constant dense<0.000000e+00> : vector<16x64xf32>
    %131 = tpu.matmul %1, %130, %cst_109 {dimension_numbers = #tpu.dot_dimension_numbers<[1], [0], [0], [1], [0, 0, 1, 1], [], []>} : vector<16x64xf32>, vector<64x64xf32>, vector<16x64xf32> -> vector<16x64xf32>
    %cst_110 = arith.constant dense<0.000000e+00> : vector<16x16xf32>
    %132 = tpu.matmul %125, %128, %cst_110 {dimension_numbers = #tpu.dot_dimension_numbers<[1], [1], [0], [0], [0, 0, 1, 0], [], []>} : vector<16x64xf32>, vector<16x64xf32>, vector<16x16xf32> -> vector<16x16xf32>
    %cst_111 = arith.constant 1.250000e-01 : f32
    %133 = vector.broadcast %cst_111 : f32 to vector<16x16xf32>
    %134 = arith.mulf %132, %133 : vector<16x16xf32>
    %cst_112 = arith.constant dense<0xFF800000> : vector<16xf32>
    %135 = vector.multi_reduction <maximumf>, %134, %cst_112 [1] : vector<16x16xf32> to vector<16xf32>
    %136 = vector.shape_cast %135 : vector<16xf32> to vector<16x1xf32>
    %137 = vector.broadcast %136 : vector<16x1xf32> to vector<16x16xf32>
    %138 = arith.subf %134, %137 : vector<16x16xf32>
    %139 = math.exp %138 : vector<16x16xf32>
    %cst_113 = arith.constant dense<0.000000e+00> : vector<16xf32>
    %140 = vector.multi_reduction <add>, %139, %cst_113 [1] : vector<16x16xf32> to vector<16xf32>
    %141 = vector.shape_cast %140 : vector<16xf32> to vector<16x1xf32>
    %142 = tpu.reciprocal %141 {approx = true} : vector<16x1xf32> -> vector<16x1xf32>
    %143 = vector.broadcast %142 : vector<16x1xf32> to vector<16x16xf32>
    %144 = arith.mulf %139, %143 : vector<16x16xf32>
    %cst_114 = arith.constant dense<0.000000e+00> : vector<16x64xf32>
    %145 = tpu.matmul %144, %131, %cst_114 {dimension_numbers = #tpu.dot_dimension_numbers<[1], [0], [0], [1], [0, 0, 1, 1], [], []>} : vector<16x16xf32>, vector<16x64xf32>, vector<16x64xf32> -> vector<16x64xf32>
    %c4_115 = arith.constant 4 : index
    %c0_116 = arith.constant 0 : index
    %c0_117 = arith.constant 0 : index
    %146 = vector.load %arg5[%c4_115, %c0_116, %c0_117] : memref<5x64x64xf32, #tpu.memory_space<vmem>>, vector<1x64x64xf32>
    %147 = vector.shape_cast %146 : vector<1x64x64xf32> to vector<64x64xf32>
    %cst_118 = arith.constant dense<0.000000e+00> : vector<16x64xf32>
    %148 = tpu.matmul %145, %147, %cst_118 {dimension_numbers = #tpu.dot_dimension_numbers<[1], [0], [0], [1], [0, 0, 1, 1], [], []>} : vector<16x64xf32>, vector<64x64xf32>, vector<16x64xf32> -> vector<16x64xf32>
    %149 = arith.addf %119, %148 : vector<16x64xf32>
    %c0_119 = arith.constant 0 : index
    %c4_120 = arith.constant 4 : index
    %c0_121 = arith.constant 0 : index
    %c0_122 = arith.constant 0 : index
    %150 = vector.load %arg9[%c0_119, %c4_120, %c0_121, %c0_122] : memref<1x5x16x16xf32, #tpu.memory_space<vmem>>, vector<1x1x16x16xf32>
    %151 = vector.shape_cast %150 : vector<1x1x16x16xf32> to vector<16x16xf32>
    %152 = vector.shape_cast %144 : vector<16x16xf32> to vector<1x1x16x16xf32>
    tpu.vector_store %arg9[%c0_119, %c4_120, %c0_121, %c0_122], %152 {strides = array<i32>} : memref<1x5x16x16xf32, #tpu.memory_space<vmem>>, vector<1x1x16x16xf32>,
    %153 = arith.addf %1, %149 : vector<16x64xf32>
    %cst_123 = arith.constant dense<0.000000e+00> : vector<16xf32>
    %154 = vector.multi_reduction <add>, %153, %cst_123 [1] : vector<16x64xf32> to vector<16xf32>
    %155 = vector.shape_cast %154 : vector<16xf32> to vector<16x1xf32>
    %cst_124 = arith.constant 6.400000e+01 : f32
    %156 = vector.broadcast %cst_124 : f32 to vector<16x1xf32>
    %157 = arith.divf %155, %156 : vector<16x1xf32>
    %158 = vector.broadcast %157 : vector<16x1xf32> to vector<16x64xf32>
    %159 = arith.subf %153, %158 : vector<16x64xf32>
    %160 = arith.mulf %159, %159 : vector<16x64xf32>
    %cst_125 = arith.constant dense<0.000000e+00> : vector<16xf32>
    %161 = vector.multi_reduction <add>, %160, %cst_125 [1] : vector<16x64xf32> to vector<16xf32>
    %162 = vector.shape_cast %161 : vector<16xf32> to vector<16x1xf32>
    %cst_126 = arith.constant 6.400000e+01 : f32
    %163 = vector.broadcast %cst_126 : f32 to vector<16x1xf32>
    %164 = arith.divf %162, %163 : vector<16x1xf32>
    %cst_127 = arith.constant 9.99999974E-6 : f32
    %165 = vector.broadcast %cst_127 : f32 to vector<16x1xf32>
    %166 = arith.addf %164, %165 : vector<16x1xf32>
    %167 = math.rsqrt %166 : vector<16x1xf32>
    %168 = vector.broadcast %167 : vector<16x1xf32> to vector<16x64xf32>
    %169 = arith.mulf %159, %168 : vector<16x64xf32>
    %c0_128 = arith.constant 0 : index
    %c0_129 = arith.constant 0 : index
    %170 = vector.load %arg6[%c0_128, %c0_129] : memref<64x256xf32, #tpu.memory_space<vmem>>, vector<64x256xf32>
    %cst_130 = arith.constant dense<0.000000e+00> : vector<16x256xf32>
    %171 = tpu.matmul %169, %170, %cst_130 {dimension_numbers = #tpu.dot_dimension_numbers<[1], [0], [0], [1], [0, 0, 1, 1], [], []>} : vector<16x64xf32>, vector<64x256xf32>, vector<16x256xf32> -> vector<16x256xf32>
    %cst_131 = arith.constant 0.000000e+00 : f32
    %172 = vector.broadcast %cst_131 : f32 to vector<16x256xf32>
    %173 = arith.maximumf %171, %172 : vector<16x256xf32>
    %c0_132 = arith.constant 0 : index
    %c0_133 = arith.constant 0 : index
    %174 = vector.load %arg7[%c0_132, %c0_133] : memref<256x64xf32, #tpu.memory_space<vmem>>, vector<256x64xf32>
    %cst_134 = arith.constant dense<0.000000e+00> : vector<16x64xf32>
    %175 = tpu.matmul %173, %174, %cst_134 {dimension_numbers = #tpu.dot_dimension_numbers<[1], [0], [0], [1], [0, 0, 1, 1], [], []>} : vector<16x256xf32>, vector<256x64xf32>, vector<16x64xf32> -> vector<16x64xf32>
    %176 = arith.addf %169, %175 : vector<16x64xf32>
    %cst_135 = arith.constant dense<0.000000e+00> : vector<16xf32>
    %177 = vector.multi_reduction <add>, %176, %cst_135 [1] : vector<16x64xf32> to vector<16xf32>
    %178 = vector.shape_cast %177 : vector<16xf32> to vector<16x1xf32>
    %cst_136 = arith.constant 6.400000e+01 : f32
    %179 = vector.broadcast %cst_136 : f32 to vector<16x1xf32>
    %180 = arith.divf %178, %179 : vector<16x1xf32>
    %181 = vector.broadcast %180 : vector<16x1xf32> to vector<16x64xf32>
    %182 = arith.subf %176, %181 : vector<16x64xf32>
    %183 = arith.mulf %182, %182 : vector<16x64xf32>
    %cst_137 = arith.constant dense<0.000000e+00> : vector<16xf32>
    %184 = vector.multi_reduction <add>, %183, %cst_137 [1] : vector<16x64xf32> to vector<16xf32>
    %185 = vector.shape_cast %184 : vector<16xf32> to vector<16x1xf32>
    %cst_138 = arith.constant 6.400000e+01 : f32
    %186 = vector.broadcast %cst_138 : f32 to vector<16x1xf32>
    %187 = arith.divf %185, %186 : vector<16x1xf32>
    %cst_139 = arith.constant 9.99999974E-6 : f32
    %188 = vector.broadcast %cst_139 : f32 to vector<16x1xf32>
    %189 = arith.addf %187, %188 : vector<16x1xf32>
    %190 = math.rsqrt %189 : vector<16x1xf32>
    %191 = vector.broadcast %190 : vector<16x1xf32> to vector<16x64xf32>
    %192 = arith.mulf %182, %191 : vector<16x64xf32>
    %c0_140 = arith.constant 0 : index
    %c0_141 = arith.constant 0 : index
    %c0_142 = arith.constant 0 : index
    %193 = vector.load %arg8[%c0_140, %c0_141, %c0_142] : memref<1x16x64xf32, #tpu.memory_space<vmem>>, vector<1x16x64xf32>
    %194 = vector.shape_cast %193 : vector<1x16x64xf32> to vector<16x64xf32>
    %195 = vector.shape_cast %192 : vector<16x64xf32> to vector<1x16x64xf32>
    tpu.vector_store %arg8[%c0_140, %c0_141, %c0_142], %195 {strides = array<i32>} : memref<1x16x64xf32, #tpu.memory_space<vmem>>, vector<1x16x64xf32>,
    return
  }
  func.func @transform_0(%arg0: i32) -> (i32, i32, i32) {
    %c0_i32 = arith.constant 0 : i32
    %c0_i32_0 = arith.constant 0 : i32
    %c0_i32_1 = arith.constant 0 : i32
    return %arg0, %c0_i32, %c0_i32_0 : i32, i32, i32
  }
  func.func @transform_1(%arg0: i32) -> (i32, i32, i32) {
    %c0_i32 = arith.constant 0 : i32
    %c0_i32_0 = arith.constant 0 : i32
    %c0_i32_1 = arith.constant 0 : i32
    %c0_i32_2 = arith.constant 0 : i32
    return %c0_i32, %c0_i32_0, %c0_i32_1 : i32, i32, i32
  }
  func.func @transform_2(%arg0: i32) -> (i32, i32, i32) {
    %c0_i32 = arith.constant 0 : i32
    %c0_i32_0 = arith.constant 0 : i32
    %c0_i32_1 = arith.constant 0 : i32
    %c0_i32_2 = arith.constant 0 : i32
    return %c0_i32, %c0_i32_0, %c0_i32_1 : i32, i32, i32
  }
  func.func @transform_3(%arg0: i32) -> (i32, i32, i32) {
    %c0_i32 = arith.constant 0 : i32
    %c0_i32_0 = arith.constant 0 : i32
    %c0_i32_1 = arith.constant 0 : i32
    %c0_i32_2 = arith.constant 0 : i32
    return %c0_i32, %c0_i32_0, %c0_i32_1 : i32, i32, i32
  }
  func.func @transform_4(%arg0: i32) -> (i32, i32, i32) {
    %c0_i32 = arith.constant 0 : i32
    %c0_i32_0 = arith.constant 0 : i32
    %c0_i32_1 = arith.constant 0 : i32
    %c0_i32_2 = arith.constant 0 : i32
    return %c0_i32, %c0_i32_0, %c0_i32_1 : i32, i32, i32
  }
  func.func @transform_5(%arg0: i32) -> (i32, i32) {
    %c0_i32 = arith.constant 0 : i32
    %c0_i32_0 = arith.constant 0 : i32
    %c0_i32_1 = arith.constant 0 : i32
    return %c0_i32, %c0_i32_0 : i32, i32
  }
  func.func @transform_6(%arg0: i32) -> (i32, i32) {
    %c0_i32 = arith.constant 0 : i32
    %c0_i32_0 = arith.constant 0 : i32
    %c0_i32_1 = arith.constant 0 : i32
    return %c0_i32, %c0_i32_0 : i32, i32
  }
  func.func @transform_7(%arg0: i32) -> (i32, i32, i32) {
    %c0_i32 = arith.constant 0 : i32
    %c0_i32_0 = arith.constant 0 : i32
    %c0_i32_1 = arith.constant 0 : i32
    return %arg0, %c0_i32, %c0_i32_0 : i32, i32, i32
  }
  func.func @transform_8(%arg0: i32) -> (i32, i32, i32, i32) {
    %c0_i32 = arith.constant 0 : i32
    %c0_i32_0 = arith.constant 0 : i32
    %c0_i32_1 = arith.constant 0 : i32
    %c0_i32_2 = arith.constant 0 : i32
    return %arg0, %c0_i32, %c0_i32_0, %c0_i32_1 : i32, i32, i32, i32
  }
}

</mosaic_0001>

<bundles_post_ra>
// kernel: tpu_custom_call.1
= control target key start
LH: loop header
LB: loop body
LE: loop exit
PB: predicated region body
PF: predicated region fallthrough
CT: control target
= control target key end

     0   :  { %s3114_s0 = inlined_call_operand.vmem [shape: f32[2,16,64], index: 0, kind: input, shape index: {}]   ;;  %s3115_s1 = inlined_call_operand.vmem [shape: f32[5,64,64], index: 1, kind: input, shape index: {}]   ;;  %s3116_s2 = inlined_call_operand.hbm [shape: f32[5,64,64], index: 2, kind: input, shape index: {}]   ;;  %s3117_s3 = inlined_call_operand.hbm [shape: f32[5,64,64], index: 3, kind: input, shape index: {}]   ;;  %s3118_s4 = inlined_call_operand.hbm [shape: f32[5,64,64], index: 4, kind: input, shape index: {}]   ;;  %s3119_s5 = inlined_call_operand.hbm [shape: f32[64,256], index: 5, kind: input, shape index: {}]   ;;  %s3120_s6 = inlined_call_operand.vmem [shape: f32[256,64], index: 6, kind: input, shape index: {}]   ;;  %s3121_s7 = inlined_call_operand.hbm [shape: f32[2,16,64], index: 7, kind: output, shape index: {0}]   ;;  %s3122_s8 = inlined_call_operand.hbm [shape: f32[2,5,16,16], index: 8, kind: output, shape index: {1}]  }
   0x1   :  { %3124 = sst [smem:[#allocation20_spill]] %s3116_s2 }
   0x2   :  { %3125 = sst [smem:[#allocation21_spill]] %s3117_s3 }
   0x3   :  { %14 = vsyncpa [#allocation3], 0 }
   0x4   :  { %15 = vsyncpa [#allocation6], 0 }
   0x5   :  { %16 = vsyncpa [#allocation9], 0 }
   0x6   :  { %17 = vsyncpa [#allocation4], 0 }
   0x7   :  { %19 = vsyncpa [#allocation4 + $0x1], 0 }
   0x8   :  { %20 = vsyncpa [#allocation12], 0 }
   0x9   :  { %22 = vsyncpa [#allocation12 + $0x1], 0  ;;  %s2518_s27 = smov 0   ;;  %s2520_s28 = smov 0  }
   0xa   :  { %s2522_s29 = smov 0   ;;  %s2524_s30 = smov 0  }
   0xb LB: > { %3126 = sst [smem:[#allocation18_spill]] %s2456_s29  ;;  %s2539_s9 = sadd.s32 4294967295, %s2460_s30   ;;  %s2460_s30 = sphi %s2524_s30, %s3138_s30   ;;  %s2456_s29 = sphi %s2522_s29, %s3135_s29   ;;  %s2452_s28 = sphi %s2520_s28, %s3137_s28   ;;  %s2448_s27 = sphi %s2518_s27, %s3136_s27  }
   0xc   : > { %s1943_s10 = sadd.s32 4294967294, %s2460_s30   ;;  %s2543_s11 = sadd.s32 1, %s2460_s30  }
   0xd   : > { %s187_s12 = sadd.s32 1, %s2456_s29  ;;  %s184_s13 = ssub.s32 %s2460_s30, %s2543_s11 }
   0xe   : > { %p197_p0 = scmp.ne.s32.totalorder %s2456_s29, %s2452_s28  ;;  %p185_p1 = scmp.eq.s32.totalorder %s184_s13, 0 }
   0xf   : > { %p198_p2 = scmp.eq.s32.totalorder %s2539_s9, 1  ;;  %p203_p3 = scmp.ne.s32.totalorder %s2452_s28, %s2448_s27 }
  0x10   : > { %p204_p4 = scmp.eq.s32.totalorder %s1943_s10, 1  ;;  %p1944_p7 = scmp.ge.s32.totalorder %s2460_s30, 1 }
  0x11   : > { %s2554_s14 = scalar_select %p185_p1, %s2456_s29, %s187_s12  }
  0x12   : > { %p2556_p5 = por %p198_p2, %p197_p0  ;;  %p2560_p6 = por %p204_p4, %p203_p3 }
  0x13   : > { %3127 = sst [smem:[#allocation19_spill]] %s2554_s14  ;;  %p237_p8 = scmp.lt.s32.totalorder %s2460_s30, 3 }
  0x14   : > { %p2130_p9 = scmp.eq.s32.totalorder %s2539_s9, 0  ;;  %s3131_s3 = sld [smem:[#allocation21_spill]] }
  0x15   : > { %p2567_p10 = pnand %p1944_p7, %p237_p8  ;;  %s3132_s2 = sld [smem:[#allocation20_spill]] }
  0x16   : > { %s2462_s25 = smov [#allocation5]   ;;  %s2463_s10 = smov 128  }
  0x17   : > { %p2110_p11 = pneg %p2567_p10  ;;  %s267_s26 = sshll.u32 %s2462_s25, 4  ;;  %s268_s26 = int_to_ptr.vmem [resolvable:$true] %s267_s26 }
  0x18   : > { %s2464_s12 = smov 8   ;;  %s2465_s13 = smov [#allocation2]  }
  0x19   : > { %p2581_p12 = pnand %p2130_p9, %p2110_p11  ;;  %s253_s18 = sshll.u32 %s2465_s13, 4  ;;  %s254_s18 = int_to_ptr.vmem [resolvable:$true] %s253_s18 }
  0x1a   : > { %s265_s20 = sshll.u32 %s3131_s3, 4  ;;  %s279_s22 = sshll.u32 %s3118_s4, 4  ;;  %s266_s20 = int_to_ptr.hbm [resolvable:$true] %s265_s20  ;;  %s280_s22 = int_to_ptr.hbm [resolvable:$true] %s279_s22 }
  0x1b   : > { %s251_s23 = sshll.u32 %s3132_s2, 4  ;;  %s293_s3 = sshll.u32 %s3119_s5, 4  ;;  %s252_s23 = int_to_ptr.hbm [resolvable:$true] %s251_s23  ;;  %s294_s3 = int_to_ptr.hbm [resolvable:$true] %s293_s3 }
  0x1c   : > { %2116 = dma.hbm_to_vmem [thread:$0]  (!%p2581_p12), %s266_s20, 5120, %s268_s26, [#allocation6], %s2463_s10, %s2463_s10, %s2464_s12  }
  0x1d   : > { %2113 = dma.hbm_to_vmem [thread:$0]  (!%p2581_p12), %s252_s23, 5120, %s254_s18, [#allocation3], %s2463_s10, %s2463_s10, %s2464_s12  }
  0x1e   : > { %s2466_s14 = smov [#allocation7]   ;;  %s2467_s20 = smov [#allocation8]  }
  0x1f   : > { %s281_s29 = sshll.u32 %s2466_s14, 4  ;;  %s295_s26 = sshll.u32 %s2467_s20, 4  ;;  %s282_s29 = int_to_ptr.vmem [resolvable:$true] %s281_s29  ;;  %s296_s26 = int_to_ptr.vmem [resolvable:$true] %s295_s26 }
  0x20   : > { %2119 = dma.hbm_to_vmem [thread:$0]  (!%p2581_p12), %s280_s22, 5120, %s282_s29, [#allocation6], %s2463_s10, %s2463_s10, %s2464_s12  }
  0x21   : > { %s2468_s13 = smov 256   ;;  %s2469_s19 = smov 16  }
  0x22   : > { %2122 = dma.hbm_to_vmem [thread:$0]  (!%p2581_p12), %s294_s3, 2048, %s296_s26, [#allocation9], %s2468_s13, %s2468_s13, %s2469_s19  }
  0x23   : > { %322 = sbr.rel (%p2567_p10) target bundleno = 3804 (0xedc), region = 48 }
  0x28   : > { %2427 = dma.done.wait (%p2130_p9), [#allocation3], 5120  }
  0x29   : > { %2429 = vsyncadd (%p2130_p9), [#allocation3], 4294962176 }
  0x2a   : > { %2431 = dma.done.wait (%p2130_p9), [#allocation6], 10240  }
  0x2b   : > { %2433 = vsyncadd (%p2130_p9), [#allocation6], 4294957056 }
  0x2c   : > { %2435 = dma.done.wait (%p2130_p9), [#allocation9], 2048  }
  0x2d   : > { %2437 = vsyncadd (%p2130_p9), [#allocation9], 4294965248  ;;  %p377_p13 = scmp.lt.s32.totalorder %s2539_s9, 1  ;;  %v391_v0 = vld [vmem:[%s3115_s1 + $0x38] sm:$0xff]  ;;  %v390_v1 = vld [vmem:[%s3115_s1 + $0x30] sm:$0xff]  ;;  %vm392_vm0 = vcmask 523264  }
  0x2e   : > { %407 = vmatpush.msra.mxu1 %v391_v0  ;;  %v389_v2 = vld [vmem:[%s3115_s1 + $0x28] sm:$0xff]  ;;  %v388_v3 = vld [vmem:[%s3115_s1 + $0x20] sm:$0xff]  ;;  %v387_v4 = vld [vmem:[%s3115_s1 + $0x18] sm:$0xff]  ;;  %vm521_vm1 = vcmask 130048   ;;  %s2701_s17 = sand.u32 1, %s2452_s28   ;;  %s2089_s19 = smul.u32 80, %s2539_s9 }
  0x2f   : > { %s378_s24 = scalar_select %p377_p13, %s2539_s9, 1  ;;  %v386_v5 = vld [vmem:[%s3115_s1 + $0x10] sm:$0xff]  ;;  %v460_v6 = vld [vmem:[#allocation5 + $0x38] sm:$0xff]  ;;  %v385_v8 = vld [vmem:[%s3115_s1 + $0x8] sm:$0xff] }
  0x30   : > { %408 = vmatpush.msra.mxu1 %v390_v1  ;;  %v459_v7 = vld [vmem:[#allocation5 + $0x30] sm:$0xff]  ;;  %469 = vmatpush.msra.mxu2 %v460_v6  ;;  %v458_v9 = vld [vmem:[#allocation5 + $0x28] sm:$0xff]  ;;  %v384_v10 = vld [vmem:[%s3115_s1] sm:$0xff]  ;;  %s2088_s23 = smul.u32 80, %s2701_s17  ;;  %s1803_s14 = scalar_lea.hbm %s3122_s8, %s2089_s19 }
  0x31   : > { %s2078_s22 = sshll.u32 %s378_s24, 4  ;;  %v457_v11 = vld [vmem:[#allocation5 + $0x20] sm:$0xff]  ;;  %v429_v13 = vld [vmem:[#allocation2 + $0x38] sm:$0xff]  ;;  %v428_v15 = vld [vmem:[#allocation2 + $0x30] sm:$0xff]  ;;  %s1806_s10 = sshll.u32 %s1803_s14, 4  ;;  %s1807_s10 = int_to_ptr.hbm [resolvable:$true] %s1806_s10 }
  0x32   : > { %409 = vmatpush.msra.mxu1 %v389_v2  ;;  %s2639_s3 = scalar_lea.vmem %s3114_s0, %s2078_s22  ;;  %470 = vmatpush.msra.mxu2 %v459_v7  ;;  %v456_v14 = vld [vmem:[#allocation5 + $0x18] sm:$0xff]  ;;  %v427_v16 = vld [vmem:[#allocation2 + $0x28] sm:$0xff]  ;;  %v426_v17 = vld [vmem:[#allocation2 + $0x20] sm:$0xff]  ;;  %s2705_s24 = scalar_lea.vmem [#allocation11], %s2088_s23 }
  0x33   : > { %v2645_v12 = vld [vmem:[%s2639_s3] sm:$0xff]  ;;  %v2650_v18 = vld [vmem:[%s2639_s3 + $0x8] sm:$0xff]  ;;  %v425_v19 = vld [vmem:[#allocation2 + $0x18] sm:$0xff]  ;;  %s1804_s23 = sshll.u32 %s2705_s24, 4  ;;  %s1775_s12 = scalar_lea.sflag [#allocation12], %s2701_s17  ;;  %s1805_s23 = int_to_ptr.vmem [resolvable:$true] %s1804_s23 }
  0x34   : > { %410 = vmatpush.msra.mxu1 %v388_v3  ;;  %471 = vmatpush.msra.mxu2 %v458_v9  ;;  %v424_v20 = vld [vmem:[#allocation2 + $0x10] sm:$0xff]  ;;  %v423_v21 = vld [vmem:[#allocation2 + $0x8] sm:$0xff]  ;;  %v422_v22 = vld [vmem:[#allocation2] sm:$0xff]  ;;  %s2368_s18 = sshra.s32 %s1807_s10, 4  ;;  %s2369_s18 = int_to_ptr.hbm [resolvable:$true] %s2368_s18 }
  0x35   : > { %v455_v23 = vld [vmem:[#allocation5 + $0x10] sm:$0xff]  ;;  %v454_v24 = vld [vmem:[#allocation5 + $0x8] sm:$0xff]  ;;  %v453_v25 = vld [vmem:[#allocation5] sm:$0xff]  ;;  %s2370_s21 = scalar_lea.hbm %s2369_s18, 80  ;;  %p2375_p3 = scmp.lt.s32.totalorder %s2369_s18, %s3122_s8 }
  0x36   : > { %411 = vmatpush.msra.mxu1 %v387_v4  ;;  %472 = vmatpush.msra.mxu2 %v457_v11  ;;  %v623_v38 = vld [vmem:[#allocation2 + $0x78] sm:$0xff]  ;;  %v622_v39 = vld [vmem:[#allocation2 + $0x70] sm:$0xff]  ;;  %v621_v40 = vld [vmem:[#allocation2 + $0x68] sm:$0xff]  ;;  %p2371_p0 = scmp.ne.s32.totalorder %s2369_s18, %s2370_s21 }
  0x37   : > { %v620_v41 = vld [vmem:[#allocation2 + $0x60] sm:$0xff]  ;;  %v619_v42 = vld [vmem:[#allocation2 + $0x58] sm:$0xff]  ;;  %v618_v43 = vld [vmem:[#allocation2 + $0x50] sm:$0xff] }
  0x38   : > { %412 = vmatpush.msra.mxu1 %v386_v5  ;;  %473 = vmatpush.msra.mxu2 %v456_v14  ;;  %v1977_v44 = vld [vmem:[%s3115_s1 + $0x78] sm:$0xff]  ;;  %v617_v45 = vld [vmem:[#allocation2 + $0x48] sm:$0xff]  ;;  %v616_v46 = vld [vmem:[#allocation2 + $0x40] sm:$0xff]  ;;  %p2372_p1 = pnand %p2371_p0, %p2556_p5 }
  0x39   : > { %600 = vmatpush.msra.mxu0 %v1977_v44  ;;  %v1976_v47 = vld [vmem:[%s3115_s1 + $0x70] sm:$0xff]  ;;  %v1975_v48 = vld [vmem:[%s3115_s1 + $0x68] sm:$0xff]  ;;  %v1974_v49 = vld [vmem:[%s3115_s1 + $0x60] sm:$0xff] }
  0x3a   : > { %413 = vmatpush.msra.mxu1 %v385_v8  ;;  %474 = vmatpush.msra.mxu2 %v455_v23  ;;  %v1973_v50 = vld [vmem:[%s3115_s1 + $0x58] sm:$0xff]  ;;  %v1972_v51 = vld [vmem:[%s3115_s1 + $0x50] sm:$0xff]  ;;  %v1971_v52 = vld [vmem:[%s3115_s1 + $0x48] sm:$0xff]  ;;  %p2373_p2 = pneg %p2372_p1 }
  0x3b   : > { %601 = vmatpush.msra.mxu0 %v1976_v47  ;;  %v1970_v53 = vld [vmem:[%s3115_s1 + $0x40] sm:$0xff]  ;;  %v655_v2 = vld [vmem:[#allocation5 + $0x78] sm:$0xff]  ;;  %v654_v3 = vld [vmem:[#allocation5 + $0x70] sm:$0xff] }
  0x3c   : > { %414 = vmatpush.msra.mxu1 %v384_v10  ;;  %475 = vmatpush.msra.mxu2 %v454_v24  ;;  %v653_v4 = vld [vmem:[#allocation5 + $0x68] sm:$0xff]  ;;  %v652_v5 = vld [vmem:[#allocation5 + $0x60] sm:$0xff]  ;;  %v651_v10 = vld [vmem:[#allocation5 + $0x58] sm:$0xff] }
  0x3d   : > { %1958 = vmatmul.msk.f32.vlgmr.msra.gmra.mxu1 %vm392_vm0, %v2645_v12  ;;  %602 = vmatpush.msra.mxu0 %v1975_v48  ;;  %v650_v11 = vld [vmem:[#allocation5 + $0x50] sm:$0xff]  ;;  %v648_v14 = vld [vmem:[#allocation5 + $0x40] sm:$0xff]  ;;  %v574_v24 = vld [vmem:[#allocation7 + $0x8] sm:$0xff] }
  0x3e   : > { %438 = vmatpush.msrb.mxu1 %v429_v13  ;;  %476 = vmatpush.msra.mxu2 %v453_v25  ;;  %v649_v13 = vld [vmem:[#allocation5 + $0x48] sm:$0xff]  ;;  %v575_v23 = vld [vmem:[#allocation7 + $0x10] sm:$0xff] }
  0x3f   : > { %1962 = vmatmul.msk.f32.vlgmr.msra.gmra.mxu2 %vm392_vm0, %v2645_v12  ;;  %603 = vmatpush.msra.mxu0 %v1974_v49 }
  0x40   : > { %439 = vmatpush.msrb.mxu1 %v428_v15 }
  0x41   : > { %604 = vmatpush.msra.mxu0 %v1973_v50 }
  0x42   : > { %440 = vmatpush.msrb.mxu1 %v427_v16 }
  0x43   : > { %605 = vmatpush.msra.mxu0 %v1972_v51 }
  0x44   : > { %441 = vmatpush.msrb.mxu1 %v426_v17  ;;  %v580_v17 = vld [vmem:[#allocation7 + $0x38] sm:$0xff] }
  0x45   : > { %1959 = vmatmul.msk.f32.gmra.mxu1 %vm392_vm0, %v2650_v18  ;;  %606 = vmatpush.msra.mxu0 %v1971_v52 }
  0x46   : > { %442 = vmatpush.msrb.mxu1 %v425_v19  ;;  %v579_v19 = vld [vmem:[#allocation7 + $0x30] sm:$0xff] }
  0x47   : > { %1963 = vmatmul.msk.f32.gmra.mxu2 %vm392_vm0, %v2650_v18  ;;  %607 = vmatpush.msra.mxu0 %v1970_v53 }
  0x48   : > { %443 = vmatpush.msrb.mxu1 %v424_v20  ;;  %1978 = vmatmul.msk.f32.vlgmr.msra.gmra.mxu0 %vm392_vm0, %v2645_v12  ;;  %v578_v20 = vld [vmem:[#allocation7 + $0x28] sm:$0xff] }
  0x4a   : > { %444 = vmatpush.msrb.mxu1 %v423_v21  ;;  %v577_v21 = vld [vmem:[#allocation7 + $0x20] sm:$0xff] }
  0x4c   : > { %445 = vmatpush.msrb.mxu1 %v422_v22  ;;  %v576_v22 = vld [vmem:[#allocation7 + $0x18] sm:$0xff] }
  0x4d   : > { %1960 = vmatmul.msk.f32.vlgmr.msrb.gmra.mxu1 %vm392_vm0, %v2645_v12 }
  0x4e   : > { %632 = vmatpush.msra.mxu1 %v623_v38 }
  0x50   : > { %633 = vmatpush.msra.mxu1 %v622_v39 }
  0x52   : > { %634 = vmatpush.msra.mxu1 %v621_v40 }
  0x54   : > { %635 = vmatpush.msra.mxu1 %v620_v41 }
  0x55   : > { %1961 = vmatmul.msk.f32.gmra.mxu1 %vm392_vm0, %v2650_v18 }
  0x56   : > { %636 = vmatpush.msra.mxu1 %v619_v42 }
  0x58   : > { %637 = vmatpush.msra.mxu1 %v618_v43  ;;  %v775_v43 = vld [vmem:[#allocation7 + $0x78] sm:$0xff] }
  0x5a   : > { %638 = vmatpush.msra.mxu1 %v617_v45 }
  0x5c   : > { %639 = vmatpush.msra.mxu1 %v616_v46 }
  0x5d   : > { %1980 = vmatmul.msk.f32.vlgmr.msra.gmra.mxu1 %vm392_vm0, %v2645_v12 }
  0x5e   : > { %790 = vmatpush.msrb.mxu1 %v775_v43 }
  0x65   : > { %1981 = vmatmul.msk.f32.gmra.mxu1 %vm392_vm0, %v2650_v18 }
  0xba   : > { %v416_v26 = vpop.f32.mrf.mxu1 }
  0xc2   : > { %v419_v27 = vpop.f32.mrf.mxu1  ;;  %v478_v30 = vpop.f32.mrf.mxu2 }
  0xc5   : > { %v609_v25 = vpop.f32.mrf.mxu0 }
  0xca   : > { %v447_v28 = vpop.f32.mrf.mxu1  ;;  %v481_v31 = vpop.f32.mrf.mxu2 }
  0xcb   : > { %564 = vmatpush.msra.mxu3 %v481_v31 }
  0xcd   : > { %565 = vmatpush.msra.mxu3 %v478_v30 }
  0xcf   : > { %2080 = vmatpush.msrb.mxu3 %v1977_v44  ;;  %v774_v44 = vld [vmem:[#allocation7 + $0x70] sm:$0xff] }
  0xd0   : > { %791 = vmatpush.msrb.mxu1 %v774_v44  ;;  %v1100_v44 = vld [vmem:[#allocation2 + $0xd8] sm:$0xff] }
  0xd1   : > { %2081 = vmatpush.msrb.mxu3 %v1976_v47 }
  0xd2   : > { %v450_v29 = vpop.f32.mrf.mxu1 }
  0xd3   : > { %1964 = vmatpush.xpose.msk.msrb.mxu2 %vm392_vm0, %v450_v29  ;;  %2082 = vmatpush.msrb.mxu3 %v1975_v48 }
  0xd5   : > { %2083 = vmatpush.msrb.mxu3 %v1974_v49 }
  0xd7   : > { %1965 = vmatpush.xpose.msk.msrb.mxu2 %vm392_vm0, %v447_v28  ;;  %2084 = vmatpush.msrb.mxu3 %v1973_v50 }
  0xd9   : > { %2085 = vmatpush.msrb.mxu3 %v1972_v51 }
  0xda   : > { %1966 = vmatmul.msk.f32.vlgmr.msrb.gmra.mxu2 %vm392_vm0, %v416_v26  ;;  %v641_v0 = vpop.f32.mrf.mxu1  ;;  %v573_v26 = vld [vmem:[#allocation7] sm:$0xff] }
  0xdb   : > { %2086 = vmatpush.msrb.mxu3 %v1971_v52  ;;  %664 = vmatpush.msra.mxu2 %v655_v2  ;;  %v2002_v2 = vld [vmem:[%s3115_s1 + $0xb0] sm:$0xff] }
  0xdd   : > { %2087 = vmatpush.msrb.mxu3 %v1970_v53  ;;  %665 = vmatpush.msra.mxu2 %v654_v3  ;;  %v773_v53 = vld [vmem:[#allocation7 + $0x68] sm:$0xff] }
  0xde   : > { %792 = vmatpush.msrb.mxu1 %v773_v53  ;;  %v871_v3 = vld [vmem:[#allocation2 + $0x88] sm:$0xff] }
  0xdf   : > { %666 = vmatpush.msra.mxu2 %v653_v4  ;;  %v2001_v4 = vld [vmem:[%s3115_s1 + $0xa8] sm:$0xff] }
  0xe1   : > { %667 = vmatpush.msra.mxu2 %v652_v5  ;;  %v870_v5 = vld [vmem:[#allocation2 + $0x80] sm:$0xff] }
  0xe2   : > { %1967 = vmatmul.msk.f32.gmra.mxu2 %vm392_vm0, %v419_v27  ;;  %v644_v9 = vpop.f32.mrf.mxu1 }
  0xe3   : > { %668 = vmatpush.msra.mxu2 %v651_v10  ;;  %v1996_v10 = vld [vmem:[%s3115_s1 + $0x80] sm:$0xff] }
  0xe5   : > { %669 = vmatpush.msra.mxu2 %v650_v11 }
  0xe7   : > { %670 = vmatpush.msra.mxu2 %v649_v13 }
  0xe9   : > { %671 = vmatpush.msra.mxu2 %v648_v14 }
  0xea   : > { %1982 = vmatmul.msk.f32.vlgmr.msra.gmra.mxu2 %vm392_vm0, %v2645_v12 }
  0xeb   : > { %819 = vmatpush.msrb.mxu2 %v580_v17 }
  0xed   : > { %820 = vmatpush.msrb.mxu2 %v579_v19 }
  0xef   : > { %821 = vmatpush.msrb.mxu2 %v578_v20 }
  0xf1   : > { %822 = vmatpush.msrb.mxu2 %v577_v21 }
  0xf2   : > { %1983 = vmatmul.msk.f32.gmra.mxu2 %vm392_vm0, %v2650_v18 }
  0xf3   : > { %823 = vmatpush.msrb.mxu2 %v576_v22  ;;  %v909_v22 = vld [vmem:[#allocation5 + $0xb8] sm:$0xff] }
  0xf5   : > { %824 = vmatpush.msrb.mxu2 %v575_v23  ;;  %v908_v23 = vld [vmem:[#allocation5 + $0xb0] sm:$0xff] }
  0xf7   : > { %825 = vmatpush.msrb.mxu2 %v574_v24 }
  0xf9   : > { %826 = vmatpush.msrb.mxu2 %v573_v26  ;;  %v906_v26 = vld [vmem:[#allocation5 + $0xa0] sm:$0xff] }
 0x15d   : > { %v513_v32 = vpop.f32.mrf.mxu2 }
 0x15e   : > { %v519_v33 = vmul.f32 0.125, %v513_v32 }
 0x160   : > { %v522_v34 = vsel %vm521_vm1, %v519_v33, -inf }
 0x161   : > { %523 = vmax.xlane.f32.xlu0 %v522_v34 }
 0x165   : > { %v516_v35 = vpop.f32.mrf.mxu2 }
 0x166   : > { %v520_v36 = vmul.f32 0.125, %v516_v35 }
 0x168   : > { %v525_v37 = vsel %vm521_vm1, %v520_v36, -inf }
 0x169   : > { %526 = vmax.xlane.f32.xlu0 %v525_v37 }
 0x16d   : > { %v673_v29 = vpop.f32.mrf.mxu2 }
 0x175   : > { %v676_v31 = vpop.f32.mrf.mxu2 }
 0x176   : > { %758 = vmatpush.msrb.mxu0 %v676_v31  ;;  %v902_v31 = vld [vmem:[#allocation5 + $0x80] sm:$0xff] }
 0x178   : > { %759 = vmatpush.msrb.mxu0 %v673_v29  ;;  %v903_v29 = vld [vmem:[#allocation5 + $0x88] sm:$0xff] }
 0x1d4   : > { %v524_v54 = vpop.xlane.xlu0 %523 }
 0x1d5   : > { %v528_v55 = vsub.f32 %v519_v33, %v524_v54  ;;  %v772_v54 = vld [vmem:[#allocation7 + $0x60] sm:$0xff] }
 0x1d6   : > { %793 = vmatpush.msrb.mxu1 %v772_v54 }
 0x1d7   : > { %v530_v56 = vmul.f32 1.442695, %v528_v55  ;;  %v877_v55 = vld [vmem:[#allocation2 + $0xb8] sm:$0xff] }
 0x1d8   : > { %886 = vmatpush.msra.mxu0 %v877_v55 }
 0x1d9   : > { %2182 = vpow2.f32 %v530_v56  ;;  %v876_v56 = vld [vmem:[#allocation2 + $0xb0] sm:$0xff] }
 0x1da   : > { %887 = vmatpush.msra.mxu0 %v876_v56 }
 0x1dc   : > { %v527_v57 = vpop.xlane.xlu0 %526 }
 0x1dd   : > { %v529_v58 = vsub.f32 %v520_v36, %v527_v57  ;;  %v771_v57 = vld [vmem:[#allocation7 + $0x58] sm:$0xff] }
 0x1de   : > { %794 = vmatpush.msrb.mxu1 %v771_v57 }
 0x1df   : > { %v2183_v59 = vpop.eup %2182  ;;  %v532_v60 = vmul.f32 1.442695, %v529_v58  ;;  %v875_v58 = vld [vmem:[#allocation2 + $0xa8] sm:$0xff] }
 0x1e0   : > { %v534_v61 = vsel %vm521_vm1, %v2183_v59, 0.0  ;;  %888 = vmatpush.msra.mxu0 %v875_v58 }
 0x1e1   : > { %2184 = vpow2.f32 %v532_v60  ;;  %535 = vadd.xlane.f32.xlu1 %v534_v61  ;;  %v874_v60 = vld [vmem:[#allocation2 + $0xa0] sm:$0xff]  ;;  %v769_v61 = vld [vmem:[#allocation7 + $0x48] sm:$0xff] }
 0x1e2   : > { %889 = vmatpush.msra.mxu0 %v874_v60  ;;  %v2027_v60 = vld [vmem:[%s3115_s1 + $0xf8] sm:$0xff] }
 0x1e7   : > { %v2185_v62 = vpop.eup %2184 }
 0x1e8   : > { %v537_v63 = vsel %vm521_vm1, %v2185_v62, 0.0 }
 0x1e9   : > { %538 = vadd.xlane.f32.xlu1 %v537_v63  ;;  %v873_v63 = vld [vmem:[#allocation2 + $0x98] sm:$0xff] }
 0x1ea   : > { %890 = vmatpush.msra.mxu0 %v873_v63  ;;  %v2024_v63 = vld [vmem:[%s3115_s1 + $0xe0] sm:$0xff] }
 0x254   : > { %v536_v1 = vpop.xlane.xlu1 %535 }
 0x255   : > { %2186 = vrcp.f32 %v536_v1  ;;  %v872_v1 = vld [vmem:[#allocation2 + $0x90] sm:$0xff] }
 0x256   : > { %891 = vmatpush.msra.mxu0 %v872_v1  ;;  %v1028_v1 = vld [vmem:[#allocation7 + $0xb0] sm:$0xff] }
 0x258   : > { %892 = vmatpush.msra.mxu0 %v871_v3  ;;  %v1027_v3 = vld [vmem:[#allocation7 + $0xa8] sm:$0xff] }
 0x25a   : > { %893 = vmatpush.msra.mxu0 %v870_v5  ;;  %v1026_v5 = vld [vmem:[#allocation7 + $0xa0] sm:$0xff] }
 0x25b   : > { %v2187_v6 = vpop.eup %2186 }
 0x25c   : > { %v539_v7 = vpop.xlane.xlu1 %538  ;;  %v542_v8 = vmul.f32 %v2187_v6, %v2183_v59  ;;  %v770_v59 = vld [vmem:[#allocation7 + $0x50] sm:$0xff]  ;;  %v2000_v6 = vld [vmem:[%s3115_s1 + $0xa0] sm:$0xff] }
 0x25d   : > { %2188 = vrcp.f32 %v539_v7  ;;  %795 = vmatpush.msrb.mxu1 %v770_v59  ;;  %v1999_v7 = vld [vmem:[%s3115_s1 + $0x98] sm:$0xff] }
 0x25e   : > { %1968 = vmatmul.msk.f32.vlgmr.msra.gmra.mxu3 %vm521_vm1, %v542_v8  ;;  %581 = vst.msk [vmem:[%s2705_s24] sm:$0xff] %vm521_vm1, %v542_v8  ;;  %v1998_v8 = vld [vmem:[%s3115_s1 + $0x90] sm:$0xff] }
 0x25f   : > { %1984 = vmatpush.xpose.msk.msra.mxu3 %vm392_vm0, %v644_v9  ;;  %796 = vmatpush.msrb.mxu1 %v769_v61  ;;  %v1997_v9 = vld [vmem:[%s3115_s1 + $0x88] sm:$0xff]  ;;  %v2026_v61 = vld [vmem:[%s3115_s1 + $0xf0] sm:$0xff] }
 0x263   : > { %v2189_v15 = vpop.eup %2188  ;;  %1985 = vmatpush.xpose.msk.msra.mxu3 %vm392_vm0, %v641_v0  ;;  %v2003_v0 = vld [vmem:[%s3115_s1 + $0xb8] sm:$0xff] }
 0x264   : > { %v543_v16 = vmul.f32 %v2189_v15, %v2185_v62  ;;  %v768_v62 = vld [vmem:[#allocation7 + $0x40] sm:$0xff] }
 0x265   : > { %797 = vmatpush.msrb.mxu1 %v768_v62  ;;  %v2025_v62 = vld [vmem:[%s3115_s1 + $0xe8] sm:$0xff] }
 0x266   : > { %1969 = vmatmul.msk.f32.gmra.mxu3 %vm521_vm1, %v543_v16  ;;  %582 = vst.msk [vmem:[%s2705_s24 + $0x8] sm:$0xff] %vm521_vm1, %v543_v16 }
 0x267   : > { %918 = vmatpush.msra.mxu1 %v909_v22 }
 0x269   : > { %919 = vmatpush.msra.mxu1 %v908_v23 }
 0x26e   : > { %1979 = vmatmul.msk.f32.vlgmr.msrb.gmra.mxu3 %vm392_vm0, %v2650_v18 }
 0x26f   : > { %854 = vmatpush.msrb.mxu3 %v2003_v0  ;;  %v1029_v0 = vld [vmem:[#allocation7 + $0xb8] sm:$0xff] }
 0x271   : > { %855 = vmatpush.msrb.mxu3 %v2002_v2  ;;  %v2023_v2 = vld [vmem:[%s3115_s1 + $0xd8] sm:$0xff] }
 0x273   : > { %856 = vmatpush.msrb.mxu3 %v2001_v4  ;;  %v2022_v4 = vld [vmem:[%s3115_s1 + $0xd0] sm:$0xff] }
 0x275   : > { %857 = vmatpush.msrb.mxu3 %v2000_v6  ;;  %v2021_v6 = vld [vmem:[%s3115_s1 + $0xc8] sm:$0xff] }
 0x276   : > { %1986 = vmatmul.msk.f32.vlgmr.msra.gmra.mxu3 %vm392_vm0, %v609_v25  ;;  %v907_v25 = vld [vmem:[#allocation5 + $0xa8] sm:$0xff] }
 0x277   : > { %858 = vmatpush.msrb.mxu3 %v1999_v7  ;;  %920 = vmatpush.msra.mxu1 %v907_v25  ;;  %v1025_v7 = vld [vmem:[#allocation7 + $0x98] sm:$0xff] }
 0x279   : > { %859 = vmatpush.msrb.mxu3 %v1998_v8  ;;  %921 = vmatpush.msra.mxu1 %v906_v26  ;;  %v2020_v8 = vld [vmem:[%s3115_s1 + $0xc0] sm:$0xff] }
 0x27b   : > { %860 = vmatpush.msrb.mxu3 %v1997_v9  ;;  %v1024_v9 = vld [vmem:[#allocation7 + $0x90] sm:$0xff] }
 0x27d   : > { %861 = vmatpush.msrb.mxu3 %v1996_v10  ;;  %v1023_v10 = vld [vmem:[#allocation7 + $0x88] sm:$0xff] }
 0x2e1   : > { %v567_v27 = vpop.f32.mrf.mxu3 }
 0x2e2   : > { %1992 = vmatmul.msk.f32.vlgmr.msrb.gmra.mxu2 %vm392_vm0, %v567_v27  ;;  %v905_v27 = vld [vmem:[#allocation5 + $0x98] sm:$0xff] }
 0x2e3   : > { %922 = vmatpush.msra.mxu1 %v905_v27  ;;  %v1136_v27 = vld [vmem:[#allocation5 + $0xf8] sm:$0xff] }
 0x2e9   : > { %v570_v28 = vpop.f32.mrf.mxu3 }
 0x2ea   : > { %1993 = vmatmul.msk.f32.gmra.mxu2 %vm392_vm0, %v570_v28  ;;  %v904_v28 = vld [vmem:[#allocation5 + $0x90] sm:$0xff] }
 0x2eb   : > { %923 = vmatpush.msra.mxu1 %v904_v28  ;;  %v1135_v28 = vld [vmem:[#allocation5 + $0xf0] sm:$0xff] }
 0x2ed   : > { %924 = vmatpush.msra.mxu1 %v903_v29  ;;  %v1134_v29 = vld [vmem:[#allocation5 + $0xe8] sm:$0xff] }
 0x2ef   : > { %925 = vmatpush.msra.mxu1 %v902_v31 }
 0x2f1   : > { %v612_v30 = vpop.f32.mrf.mxu3 }
 0x2f2   : > { %1987 = vmatmul.msk.f32.gmra.mxu3 %vm392_vm0, %v612_v30 }
 0x2f9   : > { %v708_v32 = vpop.f32.mrf.mxu3 }
 0x2fa   : > { %v714_v33 = vmul.f32 0.125, %v708_v32  ;;  %2004 = vmatmul.msk.f32.vlgmr.msrb.gmra.mxu3 %vm392_vm0, %v2645_v12 }
 0x2fc   : > { %v716_v34 = vsel %vm521_vm1, %v714_v33, -inf }
 0x2fd   : > { %717 = vmax.xlane.f32.xlu2 %v716_v34 }
 0x302   : > { %2005 = vmatmul.msk.f32.gmra.mxu3 %vm392_vm0, %v2650_v18 }
 0x365   : > { %v2772_v24 = vpop.f32.mrf.mxu2 }
 0x36d   : > { %v2774_v30 = vpop.f32.mrf.mxu2 }
 0x370   : > { %v718_v35 = vpop.xlane.xlu2 %717 }
 0x371   : > { %v722_v36 = vsub.f32 %v714_v33, %v718_v35 }
 0x373   : > { %v724_v37 = vmul.f32 1.442695, %v722_v36 }
 0x375   : > { %2190 = vpow2.f32 %v724_v37  ;;  %v711_v38 = vpop.f32.mrf.mxu3 }
 0x376   : > { %v715_v39 = vmul.f32 0.125, %v711_v38 }
 0x378   : > { %v719_v40 = vsel %vm521_vm1, %v715_v39, -inf }
 0x379   : > { %720 = vmax.xlane.f32.xlu2 %v719_v40  ;;  %v1103_v40 = vld [vmem:[#allocation2 + $0xf0] sm:$0xff] }
 0x37b   : > { %v2191_v41 = vpop.eup %2190 }
 0x37c   : > { %v728_v42 = vsel %vm521_vm1, %v2191_v41, 0.0 }
 0x37d   : > { %729 = vadd.xlane.f32.xlu0 %v728_v42  ;;  %v863_v20 = vpop.f32.mrf.mxu3  ;;  %v1101_v42 = vld [vmem:[#allocation2 + $0xe0] sm:$0xff] }
 0x385   : > { %v866_v21 = vpop.f32.mrf.mxu3 }
 0x3ec   : > { %v721_v45 = vpop.xlane.xlu2 %720 }
 0x3ed   : > { %v723_v46 = vsub.f32 %v715_v39, %v721_v45  ;;  %v1104_v39 = vld [vmem:[#allocation2 + $0xf8] sm:$0xff]  ;;  %v1099_v45 = vld [vmem:[#allocation2 + $0xd0] sm:$0xff] }
 0x3ef   : > { %v726_v47 = vmul.f32 1.442695, %v723_v46  ;;  %v1098_v46 = vld [vmem:[#allocation2 + $0xc8] sm:$0xff] }
 0x3f0   : > { %v730_v48 = vpop.xlane.xlu0 %729 }
 0x3f1   : > { %2192 = vpow2.f32 %v726_v47 }
 0x3f2   : > { %2194 = vrcp.f32 %v730_v48 }
 0x3f7   : > { %v2193_v49 = vpop.eup %2192 }
 0x3f8   : > { %v2195_v50 = vpop.eup %2194  ;;  %v731_v51 = vsel %vm521_vm1, %v2193_v49, 0.0 }
 0x3f9   : > { %732 = vadd.xlane.f32.xlu1 %v731_v51  ;;  %v736_v52 = vmul.f32 %v2195_v50, %v2191_v41  ;;  %v1102_v41 = vld [vmem:[#allocation2 + $0xe8] sm:$0xff] }
 0x3fb   : > { %1988 = vmatmul.msk.f32.vlgmr.msrb.gmra.mxu0 %vm521_vm1, %v736_v52  ;;  %1994 = vst.msk [vmem:[%s2705_s24 + $0x10] sm:$0xff] %vm521_vm1, %v736_v52 }
 0x3fc   : > { %1044 = vmatpush.msrb.mxu0 %v1029_v0 }
 0x3fe   : > { %1045 = vmatpush.msrb.mxu0 %v1028_v1 }
 0x400   : > { %1046 = vmatpush.msrb.mxu0 %v1027_v3  ;;  %v2050_v3 = vld [vmem:[%s3115_s1 + $0x130] sm:$0xff] }
 0x402   : > { %1047 = vmatpush.msrb.mxu0 %v1026_v5  ;;  %v2048_v5 = vld [vmem:[%s3115_s1 + $0x120] sm:$0xff] }
 0x404   : > { %1048 = vmatpush.msrb.mxu0 %v1025_v7  ;;  %v2046_v7 = vld [vmem:[%s3115_s1 + $0x110] sm:$0xff] }
 0x406   : > { %1049 = vmatpush.msrb.mxu0 %v1024_v9  ;;  %v2044_v9 = vld [vmem:[%s3115_s1 + $0x100] sm:$0xff] }
 0x408   : > { %1050 = vmatpush.msrb.mxu0 %v1023_v10  ;;  %v1256_v10 = vld [vmem:[#allocation7 + $0xf8] sm:$0xff] }
 0x46c   : > { %v733_v11 = vpop.xlane.xlu1 %732 }
 0x46d   : > { %2196 = vrcp.f32 %v733_v11 }
 0x473   : > { %v2197_v13 = vpop.eup %2196 }
 0x474   : > { %v737_v14 = vmul.f32 %v2197_v13, %v2193_v49  ;;  %v1097_v49 = vld [vmem:[#allocation2 + $0xc0] sm:$0xff] }
 0x475   : > { %v1022_v13 = vld [vmem:[#allocation7 + $0x80] sm:$0xff] }
 0x476   : > { %1989 = vmatmul.msk.f32.gmra.mxu0 %vm521_vm1, %v737_v14  ;;  %1995 = vst.msk [vmem:[%s2705_s24 + $0x18] sm:$0xff] %vm521_vm1, %v737_v14 }
 0x477   : > { %1051 = vmatpush.msrb.mxu0 %v1022_v13  ;;  %v1254_v13 = vld [vmem:[#allocation7 + $0xe8] sm:$0xff] }
 0x478   : > { %v761_v15 = vpop.f32.mrf.mxu0 }
 0x479   : > { %1990 = vmatmul.msk.f32.vlgmr.msrb.gmra.mxu1 %vm392_vm0, %v761_v15 }
 0x47a   : > { %1081 = vmatpush.msrb.mxu1 %v2027_v60 }
 0x47c   : > { %1082 = vmatpush.msrb.mxu1 %v2026_v61 }
 0x47e   : > { %2006 = vmatmul.msk.f32.vlgmr.msra.gmra.mxu0 %vm392_vm0, %v2645_v12  ;;  %1083 = vmatpush.msrb.mxu1 %v2025_v62 }
 0x480   : > { %1084 = vmatpush.msrb.mxu1 %v2024_v63 }
 0x482   : > { %1085 = vmatpush.msrb.mxu1 %v2023_v2  ;;  %v2051_v2 = vld [vmem:[%s3115_s1 + $0x138] sm:$0xff] }
 0x484   : > { %1086 = vmatpush.msrb.mxu1 %v2022_v4  ;;  %v2049_v4 = vld [vmem:[%s3115_s1 + $0x128] sm:$0xff] }
 0x486   : > { %2007 = vmatmul.msk.f32.gmra.mxu0 %vm392_vm0, %v2650_v18  ;;  %1087 = vmatpush.msrb.mxu1 %v2021_v6  ;;  %v2047_v6 = vld [vmem:[%s3115_s1 + $0x118] sm:$0xff] }
 0x488   : > { %1088 = vmatpush.msrb.mxu1 %v2020_v8  ;;  %v2045_v8 = vld [vmem:[%s3115_s1 + $0x108] sm:$0xff] }
 0x4f3   : > { %v764_v16 = vpop.f32.mrf.mxu0 }
 0x4f4   : > { %1991 = vmatmul.msk.f32.gmra.mxu1 %vm392_vm0, %v764_v16 }
 0x4f6   : > { %v2782_v38 = vpop.f32.mrf.mxu1 }
 0x4fb   : > { %v895_v17 = vpop.f32.mrf.mxu0 }
 0x4fc   : > { %2008 = vmatmul.msk.f32.vlgmr.msra.gmra.mxu1 %vm392_vm0, %v2645_v12 }
 0x503   : > { %v898_v19 = vpop.f32.mrf.mxu0 }
 0x504   : > { %2010 = vmatpush.xpose.msk.msra.mxu2 %vm392_vm0, %v898_v19  ;;  %2009 = vmatmul.msk.f32.gmra.mxu1 %vm392_vm0, %v2650_v18 }
 0x508   : > { %2011 = vmatpush.xpose.msk.msra.mxu2 %vm392_vm0, %v895_v17 }
 0x50b   : > { %2012 = vmatmul.msk.f32.vlgmr.msra.gmra.mxu2 %vm392_vm0, %v863_v20 }
 0x50c   : > { %1113 = vmatpush.msrb.mxu2 %v1104_v39  ;;  %2028 = vmatmul.msk.f32.vlgmr.msrb.gmra.mxu1 %vm392_vm0, %v2645_v12  ;;  %v1129_v39 = vld [vmem:[#allocation5 + $0xc0] sm:$0xff] }
 0x50e   : > { %1114 = vmatpush.msrb.mxu2 %v1103_v40 }
 0x510   : > { %1115 = vmatpush.msrb.mxu2 %v1102_v41 }
 0x512   : > { %1116 = vmatpush.msrb.mxu2 %v1101_v42 }
 0x513   : > { %2013 = vmatmul.msk.f32.gmra.mxu2 %vm392_vm0, %v866_v21 }
 0x514   : > { %1117 = vmatpush.msrb.mxu2 %v1100_v44  ;;  %2029 = vmatmul.msk.f32.gmra.mxu1 %vm392_vm0, %v2650_v18 }
 0x516   : > { %1118 = vmatpush.msrb.mxu2 %v1099_v45 }
 0x518   : > { %1119 = vmatpush.msrb.mxu2 %v1098_v46  ;;  %v1331_v46 = vld [vmem:[#allocation2 + $0x138] sm:$0xff] }
 0x51a   : > { %1120 = vmatpush.msrb.mxu2 %v1097_v49  ;;  %v1328_v49 = vld [vmem:[#allocation2 + $0x120] sm:$0xff] }
 0x51b   : > { %2030 = vmatmul.msk.f32.vlgmr.msrb.gmra.mxu2 %vm392_vm0, %v2645_v12 }
 0x51c   : > { %1271 = vmatpush.msra.mxu2 %v1256_v10 }
 0x523   : > { %2031 = vmatmul.msk.f32.gmra.mxu2 %vm392_vm0, %v2650_v18 }
 0x571   : > { %v2784_v43 = vpop.f32.mrf.mxu1 }
 0x579   : > { %v927_v50 = vpop.f32.mrf.mxu1 }
 0x581   : > { %v930_v54 = vpop.f32.mrf.mxu1 }
 0x582   : > { %1012 = vmatpush.msra.mxu3 %v930_v54 }
 0x584   : > { %1013 = vmatpush.msra.mxu3 %v927_v50  ;;  %v1327_v50 = vld [vmem:[#allocation2 + $0x118] sm:$0xff] }
 0x586   : > { %1145 = vmatpush.msrb.mxu3 %v1136_v27 }
 0x588   : > { %1146 = vmatpush.msrb.mxu3 %v1135_v28 }
 0x589   : > { %v1090_v25 = vpop.f32.mrf.mxu1 }
 0x58a   : > { %1147 = vmatpush.msrb.mxu3 %v1134_v29 }
 0x58e   : > { %v962_v32 = vpop.f32.mrf.mxu2 }
 0x58f   : > { %v968_v33 = vmul.f32 0.125, %v962_v32  ;;  %v1133_v32 = vld [vmem:[#allocation5 + $0xe0] sm:$0xff] }
 0x590   : > { %1148 = vmatpush.msrb.mxu3 %v1133_v32 }
 0x591   : > { %v970_v34 = vsel %vm521_vm1, %v968_v33, -inf  ;;  %v1093_v26 = vpop.f32.mrf.mxu1 }
 0x592   : > { %971 = vmax.xlane.f32.xlu2 %v970_v34  ;;  %v1131_v34 = vld [vmem:[#allocation5 + $0xd0] sm:$0xff] }
 0x596   : > { %v965_v35 = vpop.f32.mrf.mxu2 }
 0x597   : > { %v969_v36 = vmul.f32 0.125, %v965_v35  ;;  %v1130_v35 = vld [vmem:[#allocation5 + $0xc8] sm:$0xff] }
 0x599   : > { %v973_v37 = vsel %vm521_vm1, %v969_v36, -inf }
 0x59a   : > { %974 = vmax.xlane.f32.xlu0 %v973_v37 }
 0x59e   : > { %v1122_v17 = vpop.f32.mrf.mxu2 }
 0x5a6   : > { %v1125_v21 = vpop.f32.mrf.mxu2 }
 0x5a7   : > { %2034 = vmatpush.xpose.msk.msra.mxu0 %vm392_vm0, %v1125_v21 }
 0x5ab   : > { %2035 = vmatpush.xpose.msk.msra.mxu0 %vm392_vm0, %v1122_v17  ;;  %v1250_v17 = vld [vmem:[#allocation7 + $0xc8] sm:$0xff] }
 0x605   : > { %v972_v47 = vpop.xlane.xlu2 %971 }
 0x606   : > { %v976_v48 = vsub.f32 %v968_v33, %v972_v47  ;;  %v1132_v33 = vld [vmem:[#allocation5 + $0xd8] sm:$0xff]  ;;  %v1330_v47 = vld [vmem:[#allocation2 + $0x130] sm:$0xff] }
 0x607   : > { %1149 = vmatpush.msrb.mxu3 %v1132_v33  ;;  %v1363_v33 = vld [vmem:[#allocation5 + $0x138] sm:$0xff] }
 0x608   : > { %v978_v51 = vmul.f32 1.442695, %v976_v48  ;;  %v1329_v48 = vld [vmem:[#allocation2 + $0x128] sm:$0xff] }
 0x609   : > { %1150 = vmatpush.msrb.mxu3 %v1131_v34  ;;  %v1362_v34 = vld [vmem:[#allocation5 + $0x130] sm:$0xff] }
 0x60a   : > { %2198 = vpow2.f32 %v978_v51  ;;  %v1326_v51 = vld [vmem:[#allocation2 + $0x110] sm:$0xff] }
 0x60b   : > { %1151 = vmatpush.msrb.mxu3 %v1130_v35  ;;  %v829_v35 = vadd.f32 %v2772_v24, %v2782_v38  ;;  %v1356_v24 = vld [vmem:[#allocation5 + $0x100] sm:$0xff] }
 0x60d   : > { %v975_v52 = vpop.xlane.xlu0 %974  ;;  %1152 = vmatpush.msrb.mxu3 %v1129_v39 }
 0x60e   : > { %v977_v53 = vsub.f32 %v969_v36, %v975_v52  ;;  %v832_v36 = vadd.f32 %v2774_v30, %v2784_v43  ;;  %v1325_v52 = vld [vmem:[#allocation2 + $0x108] sm:$0xff] }
 0x610   : > { %v2199_v55 = vpop.eup %2198  ;;  %v980_v56 = vmul.f32 1.442695, %v977_v53 }
 0x611   : > { %v982_v57 = vsel %vm521_vm1, %v2199_v55, 0.0 }
 0x612   : > { %2200 = vpow2.f32 %v980_v56  ;;  %983 = vadd.xlane.f32.xlu1 %v982_v57 }
 0x618   : > { %v2201_v58 = vpop.eup %2200 }
 0x619   : > { %v985_v59 = vsel %vm521_vm1, %v2201_v58, 0.0 }
 0x61a   : > { %986 = vadd.xlane.f32.xlu2 %v985_v59 }
 0x685   : > { %v984_v11 = vpop.xlane.xlu1 %983 }
 0x686   : > { %2202 = vrcp.f32 %v984_v11  ;;  %v1255_v11 = vld [vmem:[#allocation7 + $0xf0] sm:$0xff] }
 0x687   : > { %1272 = vmatpush.msra.mxu2 %v1255_v11 }
 0x689   : > { %1273 = vmatpush.msra.mxu2 %v1254_v13 }
 0x68c   : > { %v2203_v14 = vpop.eup %2202 }
 0x68d   : > { %v990_v15 = vmul.f32 %v2203_v14, %v2199_v55  ;;  %v987_v16 = vpop.xlane.xlu2 %986  ;;  %v1324_v55 = vld [vmem:[#allocation2 + $0x100] sm:$0xff] }
 0x68e   : > { %2204 = vrcp.f32 %v987_v16  ;;  %v1253_v14 = vld [vmem:[#allocation7 + $0xe0] sm:$0xff]  ;;  %v1251_v16 = vld [vmem:[#allocation7 + $0xd0] sm:$0xff] }
 0x68f   : > { %2018 = vst.msk [vmem:[%s2705_s24 + $0x20] sm:$0xff] %vm521_vm1, %v990_v15  ;;  %2014 = vmatmul.msk.f32.vlgmr.msra.gmra.mxu3 %vm521_vm1, %v990_v15  ;;  %v1252_v15 = vld [vmem:[#allocation7 + $0xd8] sm:$0xff]  ;;  %1274 = vmatpush.msra.mxu2 %v1253_v14  ;;  %v1476_v14 = vld [vmem:[#allocation7 + $0x100] sm:$0xff] }
 0x690   : > { %1308 = vmatpush.msra.mxu3 %v2051_v2  ;;  %v1481_v2 = vld [vmem:[#allocation7 + $0x128] sm:$0xff] }
 0x691   : > { %1275 = vmatpush.msra.mxu2 %v1252_v15 }
 0x692   : > { %1309 = vmatpush.msra.mxu3 %v2050_v3  ;;  %v1480_v3 = vld [vmem:[#allocation7 + $0x120] sm:$0xff] }
 0x693   : > { %1276 = vmatpush.msra.mxu2 %v1251_v16 }
 0x694   : > { %v2205_v19 = vpop.eup %2204  ;;  %1310 = vmatpush.msra.mxu3 %v2049_v4  ;;  %v1479_v4 = vld [vmem:[#allocation7 + $0x118] sm:$0xff] }
 0x695   : > { %v991_v20 = vmul.f32 %v2205_v19, %v2201_v58  ;;  %v1249_v19 = vld [vmem:[#allocation7 + $0xc0] sm:$0xff]  ;;  %1277 = vmatpush.msra.mxu2 %v1250_v17 }
 0x696   : > { %1311 = vmatpush.msra.mxu3 %v2048_v5  ;;  %v1478_v5 = vld [vmem:[#allocation7 + $0x110] sm:$0xff] }
 0x697   : > { %2015 = vmatmul.msk.f32.gmra.mxu3 %vm521_vm1, %v991_v20  ;;  %2019 = vst.msk [vmem:[%s2705_s24 + $0x28] sm:$0xff] %vm521_vm1, %v991_v20  ;;  %1278 = vmatpush.msra.mxu2 %v1249_v19 }
 0x698   : > { %1312 = vmatpush.msra.mxu3 %v2047_v6  ;;  %v1477_v6 = vld [vmem:[#allocation7 + $0x108] sm:$0xff] }
 0x69a   : > { %1313 = vmatpush.msra.mxu3 %v2046_v7 }
 0x69c   : > { %1314 = vmatpush.msra.mxu3 %v2045_v8 }
 0x69e   : > { %1315 = vmatpush.msra.mxu3 %v2044_v9 }
 0x69f   : > { %2032 = vmatmul.msk.f32.vlgmr.msrb.gmra.mxu3 %vm392_vm0, %v2645_v12 }
 0x6a7   : > { %2033 = vmatmul.msk.f32.gmra.mxu3 %vm392_vm0, %v2650_v18 }
 0x6af   : > { %2052 = vmatmul.msk.f32.vlgmr.msra.gmra.mxu3 %vm392_vm0, %v2645_v12 }
 0x6b7   : > { %2053 = vmatmul.msk.f32.gmra.mxu3 %vm392_vm0, %v2650_v18 }
 0x712   : > { %v1015_v22 = vpop.f32.mrf.mxu3 }
 0x713   : > { %2016 = vmatmul.msk.f32.vlgmr.msrb.gmra.mxu0 %vm392_vm0, %v1015_v22 }
 0x714   : > { %1340 = vmatpush.msrb.mxu0 %v1331_v46 }
 0x716   : > { %1341 = vmatpush.msrb.mxu0 %v1330_v47 }
 0x718   : > { %1342 = vmatpush.msrb.mxu0 %v1329_v48 }
 0x71a   : > { %v1018_v23 = vpop.f32.mrf.mxu3  ;;  %1343 = vmatpush.msrb.mxu0 %v1328_v49  ;;  %v2905_v49 = vld [vmem:[%s2639_s3 + $0x8] sm:$0xff] }
 0x71b   : > { %2017 = vmatmul.msk.f32.gmra.mxu0 %vm392_vm0, %v1018_v23 }
 0x71c   : > { %1344 = vmatpush.msrb.mxu0 %v1327_v50 }
 0x71e   : > { %1345 = vmatpush.msrb.mxu0 %v1326_v51 }
 0x720   : > { %1346 = vmatpush.msrb.mxu0 %v1325_v52 }
 0x722   : > { %1347 = vmatpush.msrb.mxu0 %v1324_v55  ;;  %v1154_v58 = vpop.f32.mrf.mxu3 }
 0x723   : > { %2036 = vmatmul.msk.f32.vlgmr.msra.gmra.mxu0 %vm392_vm0, %v1090_v25 }
 0x72a   : > { %v1157_v63 = vpop.f32.mrf.mxu3 }
 0x72b   : > { %2037 = vmatmul.msk.f32.gmra.mxu0 %vm392_vm0, %v1093_v26  ;;  %1239 = vmatpush.msra.mxu1 %v1157_v63 }
 0x72d   : > { %1240 = vmatpush.msra.mxu1 %v1154_v58 }
 0x72f   : > { %1372 = vmatpush.msrb.mxu1 %v1363_v33 }
 0x731   : > { %1373 = vmatpush.msrb.mxu1 %v1362_v34 }
 0x732   : > { %v1317_v29 = vpop.f32.mrf.mxu3 }
 0x733   : > { %2054 = vmatmul.msk.f32.vlgmr.msrb.gmra.mxu0 %vm392_vm0, %v2645_v12 }
 0x73a   : > { %v1320_v32 = vpop.f32.mrf.mxu3 }
 0x73b   : > { %2055 = vmatmul.msk.f32.gmra.mxu0 %vm392_vm0, %v2650_v18 }
 0x790   : > { %v2832_v31 = vpop.f32.mrf.mxu0 }
 0x798   : > { %v1056_v37 = vpop.f32.mrf.mxu0 }
 0x799   : > { %v2836_v40 = vadd.f32 %v1056_v37, %v832_v36  ;;  %v1361_v36 = vld [vmem:[#allocation5 + $0x128] sm:$0xff]  ;;  %v1059_v37 = vadd.f32 %v2832_v31, %v829_v35  ;;  %v2899_v31 = vld [vmem:[%s2639_s3] sm:$0xff]  ;;  %s2374_s3 = scalar_lea.hbm %s3122_s8, 160 }
 0x79a   : > { %1374 = vmatpush.msrb.mxu1 %v1361_v36  ;;  %p2376_p4 = scmp.lt.s32.totalorder %s2374_s3, %s2370_s21 }
 0x79c   : > { %p2377_p7 = por %p2376_p4, %p2375_p3 }
 0x79e   : > { %p2378_p8 = pnand %p2377_p7, %p2373_p2 }
 0x7a0   : > { %v1189_v41 = vpop.f32.mrf.mxu0 }
 0x7a1   : > { %v1195_v42 = vmul.f32 0.125, %v1189_v41  ;;  %v1360_v41 = vld [vmem:[#allocation5 + $0x120] sm:$0xff] }
 0x7a2   : > { %1375 = vmatpush.msrb.mxu1 %v1360_v41 }
 0x7a3   : > { %v1197_v44 = vsel %vm521_vm1, %v1195_v42, -inf }
 0x7a4   : > { %1198 = vmax.xlane.f32.xlu0 %v1197_v44  ;;  %v1359_v44 = vld [vmem:[#allocation5 + $0x118] sm:$0xff] }
 0x7a5   : > { %1376 = vmatpush.msrb.mxu1 %v1359_v44 }
 0x7a8   : > { %v1192_v45 = vpop.f32.mrf.mxu0 }
 0x7a9   : > { %v1196_v30 = vmul.f32 0.125, %v1192_v45  ;;  %v1358_v45 = vld [vmem:[#allocation5 + $0x110] sm:$0xff] }
 0x7aa   : > { %1377 = vmatpush.msrb.mxu1 %v1358_v45 }
 0x7ab   : > { %v1200_v43 = vsel %vm521_vm1, %v1196_v30, -inf }
 0x7ac   : > { %1201 = vmax.xlane.f32.xlu1 %v1200_v43 }
 0x7b0   : > { %v1349_v12 = vpop.f32.mrf.mxu0 }
 0x7b8   : > { %v1352_v25 = vpop.f32.mrf.mxu0 }
 0x7b9   : > { %2058 = vmatpush.xpose.msk.msrb.mxu2 %vm392_vm0, %v1352_v25 }
 0x7bd   : > { %2059 = vmatpush.xpose.msk.msrb.mxu2 %vm392_vm0, %v1349_v12 }
 0x817   : > { %v1199_v53 = vpop.xlane.xlu0 %1198 }
 0x818   : > { %v1203_v54 = vsub.f32 %v1195_v42, %v1199_v53 }
 0x81a   : > { %v1205_v56 = vmul.f32 1.442695, %v1203_v54 }
 0x81c   : > { %2206 = vpow2.f32 %v1205_v56 }
 0x81f   : > { %v1202_v57 = vpop.xlane.xlu1 %1201 }
 0x820   : > { %v1204_v59 = vsub.f32 %v1196_v30, %v1202_v57  ;;  %v1357_v30 = vld [vmem:[#allocation5 + $0x108] sm:$0xff] }
 0x821   : > { %1378 = vmatpush.msrb.mxu1 %v1357_v30 }
 0x822   : > { %v2207_v60 = vpop.eup %2206  ;;  %v1207_v61 = vmul.f32 1.442695, %v1204_v59 }
 0x823   : > { %v1209_v62 = vsel %vm521_vm1, %v2207_v60, 0.0  ;;  %1379 = vmatpush.msrb.mxu1 %v1356_v24  ;;  %v1586_v24 = vld [vmem:[#allocation8 + $0x78] sm:$0xff] }
 0x824   : > { %2208 = vpow2.f32 %v1207_v61  ;;  %1210 = vadd.xlane.f32.xlu2 %v1209_v62 }
 0x82a   : > { %v2209_v0 = vpop.eup %2208 }
 0x82b   : > { %v1212_v1 = vsel %vm521_vm1, %v2209_v0, 0.0 }
 0x82c   : > { %1213 = vadd.xlane.f32.xlu0 %v1212_v1  ;;  %v1482_v1 = vld [vmem:[#allocation7 + $0x130] sm:$0xff] }
 0x897   : > { %v1211_v20 = vpop.xlane.xlu2 %1210 }
 0x898   : > { %2210 = vrcp.f32 %v1211_v20 }
 0x89e   : > { %v2211_v21 = vpop.eup %2210 }
 0x89f   : > { %v1217_v22 = vmul.f32 %v2211_v21, %v2207_v60  ;;  %v1214_v23 = vpop.xlane.xlu0 %1213 }
 0x8a0   : > { %2212 = vrcp.f32 %v1214_v23 }
 0x8a1   : > { %2042 = vst.msk [vmem:[%s2705_s24 + $0x30] sm:$0xff] %vm521_vm1, %v1217_v22  ;;  %2038 = vmatmul.msk.f32.vlgmr.msra.gmra.mxu1 %vm521_vm1, %v1217_v22 }
 0x8a6   : > { %v2213_v18 = vpop.eup %2212 }
 0x8a7   : > { %v1218_v26 = vmul.f32 %v2213_v18, %v2209_v0  ;;  %v1483_v0 = vld [vmem:[#allocation7 + $0x138] sm:$0xff]  ;;  %v2470_v18 = vmov 64.0  }
 0x8a8   : > { %1498 = vmatpush.msra.mxu0 %v1483_v0  ;;  %v1673_v0 = vld [vmem:[%s3120_s6 + $0xf0] sm:$0xff] }
 0x8a9   : > { %2039 = vmatmul.msk.f32.gmra.mxu1 %vm521_vm1, %v1218_v26  ;;  %2043 = vst.msk [vmem:[%s2705_s24 + $0x38] sm:$0xff] %vm521_vm1, %v1218_v26 }
 0x8aa   : > { %1499 = vmatpush.msra.mxu0 %v1482_v1  ;;  %v1672_v1 = vld [vmem:[%s3120_s6 + $0xe8] sm:$0xff] }
 0x8ac   : > { %1500 = vmatpush.msra.mxu0 %v1481_v2  ;;  %v1655_v2 = vld [vmem:[%s3120_s6 + $0x60] sm:$0xff] }
 0x8ae   : > { %1501 = vmatpush.msra.mxu0 %v1480_v3  ;;  %v1671_v3 = vld [vmem:[%s3120_s6 + $0xe0] sm:$0xff] }
 0x8b0   : > { %1502 = vmatpush.msra.mxu0 %v1479_v4  ;;  %v1654_v4 = vld [vmem:[%s3120_s6 + $0x58] sm:$0xff] }
 0x8b1   : > { %2056 = vmatmul.msk.f32.vlgmr.msrb.gmra.mxu1 %vm392_vm0, %v2899_v31 }
 0x8b2   : > { %1503 = vmatpush.msra.mxu0 %v1478_v5 }
 0x8b4   : > { %1504 = vmatpush.msra.mxu0 %v1477_v6  ;;  %v1670_v6 = vld [vmem:[%s3120_s6 + $0xd8] sm:$0xff] }
 0x8b6   : > { %1505 = vmatpush.msra.mxu0 %v1476_v14 }
 0x8b9   : > { %2057 = vmatmul.msk.f32.gmra.mxu1 %vm392_vm0, %v2905_v49 }
 0x91e   : > { %v1242_v27 = vpop.f32.mrf.mxu1 }
 0x91f   : > { %2040 = vmatmul.msk.f32.vlgmr.msra.gmra.mxu2 %vm392_vm0, %v1242_v27 }
 0x920   : > { %1624 = vmatpush.msra.mxu2 %v1586_v24  ;;  %v1644_v24 = vld [vmem:[%s3120_s6 + $0x8] sm:$0xff] }
 0x926   : > { %v1245_v28 = vpop.f32.mrf.mxu1 }
 0x927   : > { %2041 = vmatmul.msk.f32.gmra.mxu2 %vm392_vm0, %v1245_v28 }
 0x92e   : > { %v1381_v54 = vpop.f32.mrf.mxu1 }
 0x92f   : > { %2060 = vmatmul.msk.f32.vlgmr.msrb.gmra.mxu2 %vm392_vm0, %v1317_v29 }
 0x936   : > { %v1384_v58 = vpop.f32.mrf.mxu1 }
 0x937   : > { %2061 = vmatmul.msk.f32.gmra.mxu2 %vm392_vm0, %v1320_v32  ;;  %1466 = vmatpush.msrb.mxu3 %v1384_v58 }
 0x939   : > { %1467 = vmatpush.msrb.mxu3 %v1381_v54  ;;  %v1574_v54 = vld [vmem:[#allocation8 + $0x18] sm:$0xff] }
 0x9a2   : > { %v1280_v39 = vpop.f32.mrf.mxu2 }
 0x9a3   : > { %v2893_v42 = vadd.f32 %v1280_v39, %v1059_v37 }
 0x9aa   : > { %v1283_v43 = vpop.f32.mrf.mxu2 }
 0x9ab   : > { %v2896_v38 = vadd.f32 %v1283_v43, %v2836_v40  ;;  %v1585_v43 = vld [vmem:[#allocation8 + $0x70] sm:$0xff] }
 0x9ac   : > { %1601 = vmatpush.msra.mxu1 %v1585_v43 }
 0x9b2   : > { %v1416_v46 = vpop.f32.mrf.mxu2 }
 0x9b3   : > { %v1422_v47 = vmul.f32 0.125, %v1416_v46  ;;  %v1581_v46 = vld [vmem:[#allocation8 + $0x50] sm:$0xff] }
 0x9b5   : > { %v1424_v48 = vsel %vm521_vm1, %v1422_v47, -inf }
 0x9b6   : > { %1425 = vmax.xlane.f32.xlu1 %v1424_v48  ;;  %v1579_v48 = vld [vmem:[#allocation8 + $0x40] sm:$0xff] }
 0x9ba   : > { %v1419_v50 = vpop.f32.mrf.mxu2 }
 0x9bb   : > { %v1423_v40 = vmul.f32 0.125, %v1419_v50  ;;  %v1577_v50 = vld [vmem:[#allocation8 + $0x30] sm:$0xff] }
 0x9bd   : > { %v1427_v51 = vsel %vm521_vm1, %v1423_v40, -inf }
 0x9be   : > { %1428 = vmax.xlane.f32.xlu2 %v1427_v51  ;;  %v1575_v51 = vld [vmem:[#allocation8 + $0x20] sm:$0xff] }
 0xa29   : > { %v1426_v52 = vpop.xlane.xlu1 %1425 }
 0xa2a   : > { %v1430_v53 = vsub.f32 %v1422_v47, %v1426_v52  ;;  %v1582_v47 = vld [vmem:[#allocation8 + $0x58] sm:$0xff]  ;;  %v1576_v52 = vld [vmem:[#allocation8 + $0x28] sm:$0xff] }
 0xa2c   : > { %v1432_v55 = vmul.f32 1.442695, %v1430_v53  ;;  %v1573_v53 = vld [vmem:[#allocation8 + $0x10] sm:$0xff] }
 0xa2e   : > { %2214 = vpow2.f32 %v1432_v55  ;;  %v1571_v55 = vld [vmem:[#allocation8] sm:$0xff] }
 0xa31   : > { %v1429_v56 = vpop.xlane.xlu2 %1428 }
 0xa32   : > { %v1431_v57 = vsub.f32 %v1423_v40, %v1429_v56  ;;  %v1578_v40 = vld [vmem:[#allocation8 + $0x38] sm:$0xff]  ;;  %v1572_v56 = vld [vmem:[#allocation8 + $0x8] sm:$0xff] }
 0xa34   : > { %v2215_v59 = vpop.eup %2214  ;;  %v1434_v60 = vmul.f32 1.442695, %v1431_v57 }
 0xa35   : > { %v1436_v61 = vsel %vm521_vm1, %v2215_v59, 0.0 }
 0xa36   : > { %2216 = vpow2.f32 %v1434_v60  ;;  %1437 = vadd.xlane.f32.xlu0 %v1436_v61  ;;  %v1657_v60 = vld [vmem:[%s3120_s6 + $0x70] sm:$0xff]  ;;  %v1674_v61 = vld [vmem:[%s3120_s6 + $0xf8] sm:$0xff] }
 0xa37   : > { %1698 = vmatpush.msrb.mxu0 %v1674_v61 }
 0xa39   : > { %1699 = vmatpush.msrb.mxu0 %v1673_v0 }
 0xa3b   : > { %1700 = vmatpush.msrb.mxu0 %v1672_v1 }
 0xa3c   : > { %v2217_v62 = vpop.eup %2216 }
 0xa3d   : > { %v1439_v63 = vsel %vm521_vm1, %v2217_v62, 0.0  ;;  %1701 = vmatpush.msrb.mxu0 %v1671_v3 }
 0xa3e   : > { %1440 = vadd.xlane.f32.xlu1 %v1439_v63  ;;  %v1656_v63 = vld [vmem:[%s3120_s6 + $0x68] sm:$0xff] }
 0xa3f   : > { %1702 = vmatpush.msrb.mxu0 %v1670_v6 }
 0xaa9   : > { %v1438_v7 = vpop.xlane.xlu0 %1437 }
 0xaaa   : > { %2218 = vrcp.f32 %v1438_v7 }
 0xab0   : > { %v2219_v8 = vpop.eup %2218 }
 0xab1   : > { %v1444_v9 = vmul.f32 %v2219_v8, %v2215_v59  ;;  %v1441_v10 = vpop.xlane.xlu1 %1440  ;;  %v1658_v59 = vld [vmem:[%s3120_s6 + $0x78] sm:$0xff]  ;;  %v1653_v8 = vld [vmem:[%s3120_s6 + $0x50] sm:$0xff] }
 0xab2   : > { %2220 = vrcp.f32 %v1441_v10  ;;  %1675 = vmatpush.msra.mxu3 %v1658_v59 }
 0xab3   : > { %2066 = vst.msk [vmem:[%s2705_s24 + $0x40] sm:$0xff] %vm521_vm1, %v1444_v9  ;;  %2062 = vmatmul.msk.f32.vlgmr.msrb.gmra.mxu3 %vm521_vm1, %v1444_v9  ;;  %2222 = vrcp.f32 %v2470_v18  ;;  %v1669_v9 = vld [vmem:[%s3120_s6 + $0xd0] sm:$0xff] }
 0xab4   : > { %1676 = vmatpush.msra.mxu3 %v1657_v60  ;;  %1703 = vmatpush.msrb.mxu0 %v1669_v9 }
 0xab6   : > { %1677 = vmatpush.msra.mxu3 %v1656_v63 }
 0xab8   : > { %v2221_v11 = vpop.eup %2220  ;;  %1678 = vmatpush.msra.mxu3 %v1655_v2 }
 0xab9   : > { %v1445_v13 = vmul.f32 %v2221_v11, %v2217_v62  ;;  %v2223_v26 = vpop.eup %2222 }
 0xaba   : > { %v1527_v27 = vmul.f32 64.0, %v2223_v26  ;;  %vm1531_vm2 = vweird.f32 %v2223_v26  ;;  %1679 = vmatpush.msra.mxu3 %v1654_v4 }
 0xabb   : > { %2063 = vmatmul.msk.f32.gmra.mxu3 %vm521_vm1, %v1445_v13  ;;  %2067 = vst.msk [vmem:[%s2705_s24 + $0x48] sm:$0xff] %vm521_vm1, %v1445_v13  ;;  %v1652_v13 = vld [vmem:[%s3120_s6 + $0x48] sm:$0xff] }
 0xabc   : > { %v1528_v28 = vsub.f32 1.0, %v1527_v27  ;;  %1680 = vmatpush.msra.mxu3 %v1653_v8 }
 0xabe   : > { %v1529_v29 = vmul.f32 %v2223_v26, %v1528_v28  ;;  %1681 = vmatpush.msra.mxu3 %v1652_v13 }
 0xac0   : > { %v1530_v32 = vadd.f32 %v2223_v26, %v1529_v29  ;;  %v1664_v29 = vld [vmem:[%s3120_s6 + $0xa8] sm:$0xff] }
 0xac2   : > { %v2926_v33 = vsel %vm1531_vm2, %v2223_v26, %v1530_v32  ;;  %v1648_v26 = vld [vmem:[%s3120_s6 + $0x28] sm:$0xff]  ;;  %v1647_v32 = vld [vmem:[%s3120_s6 + $0x20] sm:$0xff] }
 0xb36   : > { %v1469_v15 = vpop.f32.mrf.mxu3 }
 0xb37   : > { %2064 = vmatmul.msk.f32.vlgmr.msra.gmra.mxu0 %vm392_vm0, %v1469_v15  ;;  %v1668_v15 = vld [vmem:[%s3120_s6 + $0xc8] sm:$0xff] }
 0xb38   : > { %1704 = vmatpush.msrb.mxu0 %v1668_v15 }
 0xb3e   : > { %v1472_v16 = vpop.f32.mrf.mxu3 }
 0xb3f   : > { %2065 = vmatmul.msk.f32.gmra.mxu0 %vm392_vm0, %v1472_v16  ;;  %v1651_v16 = vld [vmem:[%s3120_s6 + $0x40] sm:$0xff] }
 0xb40   : > { %1682 = vmatpush.msra.mxu3 %v1651_v16 }
 0xbb4   : > { %v1507_v17 = vpop.f32.mrf.mxu0 }
 0xbb5   : > { %v1513_v19 = vadd.f32 %v1507_v17, %v2893_v42 }
 0xbb7   : > { %v1518_v20 = vadd.f32 %v2899_v31, %v1513_v19  ;;  %v1584_v31 = vld [vmem:[#allocation8 + $0x68] sm:$0xff]  ;;  %v1667_v19 = vld [vmem:[%s3120_s6 + $0xc0] sm:$0xff] }
 0xbb8   : > { %1625 = vmatpush.msra.mxu2 %v1584_v31  ;;  %1705 = vmatpush.msrb.mxu0 %v1667_v19  ;;  %v1643_v31 = vld [vmem:[%s3120_s6] sm:$0xff] }
 0xbb9   : > { %v1520_v12 = vsel %vm392_vm0, %v1518_v20, 0.0 }
 0xbba   : > { %1521 = vadd.xlane.f32.xlu2 %v1520_v12  ;;  %1626 = vmatpush.msra.mxu2 %v1582_v47  ;;  %v1660_v47 = vld [vmem:[%s3120_s6 + $0x88] sm:$0xff] }
 0xbbc   : > { %v1510_v21 = vpop.f32.mrf.mxu0 }
 0xbbd   : > { %v1514_v22 = vadd.f32 %v1510_v21, %v2896_v38  ;;  %v1583_v38 = vld [vmem:[#allocation8 + $0x60] sm:$0xff]  ;;  %v1666_v21 = vld [vmem:[%s3120_s6 + $0xb8] sm:$0xff] }
 0xbbe   : > { %1602 = vmatpush.msra.mxu1 %v1583_v38  ;;  %1706 = vmatpush.msrb.mxu0 %v1666_v21  ;;  %v1663_v38 = vld [vmem:[%s3120_s6 + $0xa0] sm:$0xff] }
 0xbbf   : > { %v1519_v23 = vadd.f32 %v2905_v49, %v1514_v22  ;;  %v1580_v49 = vld [vmem:[#allocation8 + $0x48] sm:$0xff]  ;;  %v1649_v22 = vld [vmem:[%s3120_s6 + $0x30] sm:$0xff] }
 0xbc0   : > { %1603 = vmatpush.msra.mxu1 %v1581_v46  ;;  %1627 = vmatpush.msra.mxu2 %v1580_v49  ;;  %v1661_v46 = vld [vmem:[%s3120_s6 + $0x90] sm:$0xff] }
 0xbc1   : > { %v1523_v25 = vsel %vm392_vm0, %v1519_v23, 0.0 }
 0xbc2   : > { %1524 = vadd.xlane.f32.xlu0 %v1523_v25  ;;  %1604 = vmatpush.msra.mxu1 %v1579_v48  ;;  %v1665_v25 = vld [vmem:[%s3120_s6 + $0xb0] sm:$0xff]  ;;  %v1659_v48 = vld [vmem:[%s3120_s6 + $0x80] sm:$0xff] }
 0xbc3   : > { %1628 = vmatpush.msra.mxu2 %v1578_v40  ;;  %1707 = vmatpush.msrb.mxu0 %v1665_v25 }
 0xbc4   : > { %1605 = vmatpush.msra.mxu1 %v1577_v50 }
 0xbc5   : > { %1629 = vmatpush.msra.mxu2 %v1576_v52  ;;  %1708 = vmatpush.msrb.mxu0 %v1664_v29 }
 0xbc6   : > { %1606 = vmatpush.msra.mxu1 %v1575_v51 }
 0xbc7   : > { %1630 = vmatpush.msra.mxu2 %v1574_v54  ;;  %1709 = vmatpush.msrb.mxu0 %v1663_v38 }
 0xbc8   : > { %1607 = vmatpush.msra.mxu1 %v1573_v53 }
 0xbc9   : > { %1631 = vmatpush.msra.mxu2 %v1572_v56 }
 0xbca   : > { %1608 = vmatpush.msra.mxu1 %v1571_v55 }
 0xc2d   : > { %v1522_v34 = vpop.xlane.xlu2 %1521 }
 0xc2e   : > { %v1533_v35 = vmul.f32 %v2926_v33, %v1522_v34 }
 0xc30   : > { %v2929_v36 = vsub.f32 %v1518_v20, %v1533_v35  ;;  %v1650_v20 = vld [vmem:[%s3120_s6 + $0x38] sm:$0xff] }
 0xc31   : > { %1683 = vmatpush.msra.mxu3 %v1650_v20 }
 0xc32   : > { %v1537_v37 = vmul.f32 %v2929_v36, %v2929_v36 }
 0xc33   : > { %1684 = vmatpush.msra.mxu3 %v1649_v22 }
 0xc34   : > { %v1539_v39 = vsel %vm392_vm0, %v1537_v37, 0.0 }
 0xc35   : > { %1540 = vadd.xlane.f32.xlu1 %v1539_v39  ;;  %v1525_v41 = vpop.xlane.xlu0 %1524  ;;  %1685 = vmatpush.msra.mxu3 %v1648_v26  ;;  %v1646_v39 = vld [vmem:[%s3120_s6 + $0x18] sm:$0xff] }
 0xc36   : > { %v1534_v42 = vmul.f32 %v2926_v33, %v1525_v41 }
 0xc37   : > { %1686 = vmatpush.msra.mxu3 %v1647_v32 }
 0xc38   : > { %v2935_v44 = vsub.f32 %v1519_v23, %v1534_v42  ;;  %v1645_v42 = vld [vmem:[%s3120_s6 + $0x10] sm:$0xff] }
 0xc39   : > { %1687 = vmatpush.msra.mxu3 %v1646_v39 }
 0xc3a   : > { %v1538_v45 = vmul.f32 %v2935_v44, %v2935_v44 }
 0xc3b   : > { %1688 = vmatpush.msra.mxu3 %v1645_v42 }
 0xc3c   : > { %v1542_v30 = vsel %vm392_vm0, %v1538_v45, 0.0 }
 0xc3d   : > { %1543 = vadd.xlane.f32.xlu2 %v1542_v30  ;;  %1689 = vmatpush.msra.mxu3 %v1644_v24 }
 0xc3f   : > { %1690 = vmatpush.msra.mxu3 %v1643_v31 }
 0xca8   : > { %v1541_v57 = vpop.xlane.xlu1 %1540 }
 0xca9   : > { %v1545_v58 = vmul.f32 %v1541_v57, %v2926_v33 }
 0xcab   : > { %v1547_v62 = vadd.f32 1e-05, %v1545_v58 }
 0xcad   : > { %2224 = vrsqrt.f32 %v1547_v62  ;;  %vm1555_vm4 = vweird.f32 %v1547_v62 }
 0xcb0   : > { %v1544_v5 = vpop.xlane.xlu2 %1543 }
 0xcb1   : > { %v1546_v7 = vmul.f32 %v1544_v5, %v2926_v33 }
 0xcb3   : > { %v2225_v10 = vpop.eup %2224  ;;  %v1548_v11 = vadd.f32 1e-05, %v1546_v7 }
 0xcb4   : > { %v1550_v14 = vmul.f32 %v2225_v10, %v1547_v62  ;;  %vm1556_vm3 = vweird.f32 %v2225_v10 }
 0xcb5   : > { %2226 = vrsqrt.f32 %v1548_v11  ;;  %vm1557_vm5 = vmor %vm1555_vm4, %vm1556_vm3  ;;  %vm1565_vm7 = vweird.f32 %v1548_v11 }
 0xcb6   : > { %v1551_v17 = vmul.f32 %v2225_v10, %v1550_v14 }
 0xcb8   : > { %v1552_v12 = vmul.f32 0.5, %v1551_v17 }
 0xcba   : > { %v1553_v23 = vsub.f32 1.5, %v1552_v12 }
 0xcbb   : > { %v2227_v18 = vpop.eup %2226 }
 0xcbc   : > { %v1554_v27 = vmul.f32 %v2225_v10, %v1553_v23  ;;  %v1560_v28 = vmul.f32 %v2227_v18, %v1548_v11  ;;  %vm1566_vm6 = vweird.f32 %v2227_v18 }
 0xcbd   : > { %vm1567_vm8 = vmor %vm1565_vm7, %vm1566_vm6 }
 0xcbe   : > { %v1558_v34 = vsel %vm1557_vm5, %v2225_v10, %v1554_v27  ;;  %v1561_v35 = vmul.f32 %v2227_v18, %v1560_v28 }
 0xcbf   : > { %v1569_v37 = vmul.f32 %v1558_v34, %v2929_v36 }
 0xcc0   : > { %v1562_v41 = vmul.f32 0.5, %v1561_v35 }
 0xcc1   : > { %2068 = vmatmul.msk.f32.vlgmr.msra.gmra.mxu1 %vm392_vm0, %v1569_v37  ;;  %2070 = vmatmul.msk.f32.vlgmr.msra.gmra.mxu2 %vm392_vm0, %v1569_v37 }
 0xcc2   : > { %v1563_v45 = vsub.f32 1.5, %v1562_v41 }
 0xcc4   : > { %v1564_v36 = vmul.f32 %v2227_v18, %v1563_v45 }
 0xcc6   : > { %v1568_v30 = vsel %vm1567_vm8, %v2227_v18, %v1564_v36 }
 0xcc7   : > { %v1570_v43 = vmul.f32 %v1568_v30, %v2935_v44  ;;  %v1662_v44 = vld [vmem:[%s3120_s6 + $0x98] sm:$0xff] }
 0xcc8   : > { %1710 = vmatpush.msrb.mxu0 %v1662_v44 }
 0xcc9   : > { %2069 = vmatmul.msk.f32.gmra.mxu1 %vm392_vm0, %v1570_v43  ;;  %2071 = vmatmul.msk.f32.gmra.mxu2 %vm392_vm0, %v1570_v43 }
 0xcca   : > { %1711 = vmatpush.msrb.mxu0 %v1661_v46 }
 0xccc   : > { %1712 = vmatpush.msrb.mxu0 %v1660_v47 }
 0xcce   : > { %1713 = vmatpush.msrb.mxu0 %v1659_v48 }
 0xd3e   : > { %v1610_v49 = vpop.f32.mrf.mxu1 }
 0xd3f   : > { %v1639_v50 = vmax.f32 %v1610_v49, 0.0 }
 0xd41   : > { %1691 = vmatmul.f32.vlgmr.msra.gmra.mxu3 %v1639_v50 }
 0xd44   : > { %v1633_v40 = vpop.f32.mrf.mxu2 }
 0xd45   : > { %v1640_v51 = vmax.f32 %v1633_v40, 0.0 }
 0xd46   : > { %v1613_v52 = vpop.f32.mrf.mxu1 }
 0xd47   : > { %v1641_v53 = vmax.f32 %v1613_v52, 0.0  ;;  %1714 = vmatmul.f32.vlgmr.msrb.gmra.mxu0 %v1640_v51 }
 0xd49   : > { %1694 = vmatmul.f32.gmra.mxu3 %v1641_v53 }
 0xd4c   : > { %v1636_v54 = vpop.f32.mrf.mxu2 }
 0xd4d   : > { %v1642_v55 = vmax.f32 %v1636_v54, 0.0 }
 0xd4f   : > { %1717 = vmatmul.f32.gmra.mxu0 %v1642_v55 }
 0xdc4   : > { %v1692_v56 = vpop.f32.mrf.mxu3  ;;  %v1715_v57 = vpop.f32.mrf.mxu0 }
 0xdc5   : > { %v1716_v58 = vadd.f32 %v1715_v57, %v1692_v56 }
 0xdc7   : > { %v1721_v59 = vadd.f32 %v1716_v58, %v1569_v37 }
 0xdc9   : > { %v1723_v60 = vsel %vm392_vm0, %v1721_v59, 0.0 }
 0xdca   : > { %1724 = vadd.xlane.f32.xlu0 %v1723_v60 }
 0xdcc   : > { %v1695_v61 = vpop.f32.mrf.mxu3  ;;  %v1718_v62 = vpop.f32.mrf.mxu0 }
 0xdcd   : > { %v1719_v63 = vadd.f32 %v1718_v62, %v1695_v61 }
 0xdcf   : > { %v1722_v0 = vadd.f32 %v1719_v63, %v1570_v43 }
 0xdd1   : > { %v1726_v1 = vsel %vm392_vm0, %v1722_v0, 0.0 }
 0xdd2   : > { %1727 = vadd.xlane.f32.xlu1 %v1726_v1 }
 0xe3d   : > { %v1725_v2 = vpop.xlane.xlu0 %1724 }
 0xe3e   : > { %v1729_v3 = vmul.f32 %v1725_v2, %v2926_v33 }
 0xe40   : > { %v1731_v4 = vsub.f32 %v1721_v59, %v1729_v3 }
 0xe42   : > { %v1733_v5 = vmul.f32 %v1731_v4, %v1731_v4 }
 0xe44   : > { %v1735_v6 = vsel %vm392_vm0, %v1733_v5, 0.0 }
 0xe45   : > { %v1728_v7 = vpop.xlane.xlu1 %1727  ;;  %1736 = vadd.xlane.f32.xlu2 %v1735_v6 }
 0xe46   : > { %v1730_v8 = vmul.f32 %v1728_v7, %v2926_v33 }
 0xe48   : > { %v3049_v9 = vsub.f32 %v1722_v0, %v1730_v8 }
 0xe4a   : > { %v1734_v10 = vmul.f32 %v3049_v9, %v3049_v9 }
 0xe4c   : > { %v1738_v11 = vsel %vm392_vm0, %v1734_v10, 0.0 }
 0xe4d   : > { %1739 = vadd.xlane.f32.xlu0 %v1738_v11 }
 0xe4e   : > { %2381 = shalt.err (!%p2378_p8)
}
 0xe4f   : > { %s2471_s24 = smov 128   ;;  %s2472_s13 = smov 8  }
 0xe50   : > { %2107 = dma.vmem_to_hbm [thread:$0]  (%p2556_p5), %s1805_s23, 1280, %s1807_s10, %s1775_s12, %s2471_s24, %s2471_s24, %s2472_s13  }
 0xe51   : > { %s1955_s19 = sshll.u32 %s2701_s17, 4  ;;  %s2079_s2 = sshll.u32 %s2539_s9, 4 }
 0xe52   : > { %s369_s29 = scalar_lea.vmem [#allocation10], %s1955_s19  ;;  %s1786_s10 = scalar_lea.hbm %s3121_s7, %s2079_s2 }
 0xe53   : > { %s1787_s12 = sshll.u32 %s369_s29, 4  ;;  %s1789_s18 = sshll.u32 %s1786_s10, 4  ;;  %s1788_s12 = int_to_ptr.vmem [resolvable:$true] %s1787_s12  ;;  %s1790_s18 = int_to_ptr.hbm [resolvable:$true] %s1789_s18 }
 0xe54   : > { %s1770_s9 = scalar_lea.sflag [#allocation4], %s2701_s17  ;;  %s2396_s21 = sshra.s32 %s1790_s18, 4  ;;  %s2397_s21 = int_to_ptr.hbm [resolvable:$true] %s2396_s21 }
 0xe55   : > { %s2398_s22 = scalar_lea.hbm %s2397_s21, 16  ;;  %s2402_s20 = scalar_lea.hbm %s3121_s7, 32 }
 0xe56   : > { %p2399_p9 = scmp.ne.s32.totalorder %s2397_s21, %s2398_s22  ;;  %p2403_p12 = scmp.lt.s32.totalorder %s2397_s21, %s3121_s7 }
 0xe57   : > { %p2404_p13 = scmp.lt.s32.totalorder %s2402_s20, %s2398_s22 }
 0xe58   : > { %p2400_p10 = pnand %p2399_p9, %p2556_p5 }
 0xe59   : > { %p2405_p0 = por %p2404_p13, %p2403_p12 }
 0xe5a   : > { %p2401_p11 = pneg %p2400_p10 }
 0xe5c   : > { %p2406_p1 = pnand %p2405_p0, %p2401_p11 }
 0xeb8   : > { %v1737_v13 = vpop.xlane.xlu2 %1736 }
 0xeb9   : > { %v1741_v14 = vmul.f32 %v1737_v13, %v2926_v33 }
 0xebb   : > { %v1743_v15 = vadd.f32 1e-05, %v1741_v14 }
 0xebd   : > { %2228 = vrsqrt.f32 %v1743_v15  ;;  %vm1751_vm10 = vweird.f32 %v1743_v15 }
 0xec0   : > { %v1740_v16 = vpop.xlane.xlu0 %1739 }
 0xec1   : > { %v1742_v17 = vmul.f32 %v1740_v16, %v2926_v33 }
 0xec3   : > { %v2229_v19 = vpop.eup %2228  ;;  %v1744_v20 = vadd.f32 1e-05, %v1742_v17 }
 0xec4   : > { %v1746_v12 = vmul.f32 %v2229_v19, %v1743_v15  ;;  %vm1752_vm9 = vweird.f32 %v2229_v19 }
 0xec5   : > { %2230 = vrsqrt.f32 %v1744_v20  ;;  %vm1753_vm11 = vmor %vm1751_vm10, %vm1752_vm9  ;;  %vm1761_vm13 = vweird.f32 %v1744_v20 }
 0xec6   : > { %v1747_v21 = vmul.f32 %v2229_v19, %v1746_v12 }
 0xec8   : > { %v1748_v22 = vmul.f32 0.5, %v1747_v21 }
 0xeca   : > { %v1749_v23 = vsub.f32 1.5, %v1748_v22 }
 0xecb   : > { %v2231_v25 = vpop.eup %2230 }
 0xecc   : > { %v1750_v18 = vmul.f32 %v2229_v19, %v1749_v23  ;;  %v1756_v26 = vmul.f32 %v2231_v25, %v1744_v20  ;;  %vm1762_vm12 = vweird.f32 %v2231_v25 }
 0xecd   : > { %vm1763_vm14 = vmor %vm1761_vm13, %vm1762_vm12 }
 0xece   : > { %v1754_v27 = vsel %vm1753_vm11, %v2229_v19, %v1750_v18  ;;  %v1757_v28 = vmul.f32 %v2231_v25, %v1756_v26 }
 0xecf   : > { %v1765_v29 = vmul.f32 %v1754_v27, %v1731_v4 }
 0xed0   : > { %v1758_v33 = vmul.f32 0.5, %v1757_v28 }
 0xed1   : > { %1767 = vst.msk [vmem:[%s369_s29] sm:$0xff] %vm392_vm0, %v1765_v29 }
 0xed2   : > { %v1759_v32 = vsub.f32 1.5, %v1758_v33 }
 0xed4   : > { %v1760_v34 = vmul.f32 %v2231_v25, %v1759_v32 }
 0xed6   : > { %v1764_v35 = vsel %vm1763_vm14, %v2231_v25, %v1760_v34 }
 0xed7   : > { %v1766_v37 = vmul.f32 %v1764_v35, %v3049_v9 }
 0xed9   : > { %1768 = vst.msk [vmem:[%s369_s29 + $0x8] sm:$0xff] %vm392_vm0, %v1766_v37 }
 0xeda   : > { %2409 = shalt.err (!%p2406_p1)
}
 0xedb   : > { %2106 = dma.vmem_to_hbm [thread:$0]  (%p2556_p5), %s1788_s12, 256, %s1790_s18, %s1770_s9, %s2471_s24, %s2471_s24, %s2472_s13  }
 0xedc PF: > { %p2138_p2 = scmp.ge.s32.totalorder %s2460_s30, 2  ;;  %s1821_s17 = sand.u32 1, %s2448_s27  }
 0xedd   : > { %s1822_s2 = scalar_lea.sflag [#allocation4], %s1821_s17 }
 0xede   : > { %p2124_p3 = pnand %p2138_p2, %p2560_p6 }
 0xee0   : > { %p2125_p4 = pneg %p2124_p3 }
 0xee2   : > { %2439 = dma.done.wait (%p2125_p4), %s1822_s2, 256  }
 0xee3   : > { %2441 = vsyncadd (%p2125_p4), %s1822_s2, 4294967040  ;;  %s1832_s29 = scalar_lea.sflag [#allocation12], %s1821_s17 }
 0xee4   : > { %2443 = dma.done.wait (%p2125_p4), %s1832_s29, 1280  }
 0xee5   : > { %2445 = vsyncadd (%p2125_p4), %s1832_s29, 4294966016  ;;  %s3134_s15 = sld [smem:[#allocation18_spill]]  ;;  %p25_p5 = scmp.ge.s32.totalorder %s2543_s11, 4  }
 0xee6   : > { %s3135_s29 = sld [smem:[#allocation19_spill]]  ;;  %s3136_s27 = smov %s2452_s28 }
 0xee7   : > { %s3138_s30 = smov %s2543_s11  ;;  %27 = sbr.rel (!%p25_p5) target bundleno = 11 (0xb), region = 137 }
 0xeeb   : > { %s3137_s28 = smov %s3134_s15 }
 0xeec   :  { %1838 = vsyncpa [#allocation3], 1 }
 0xeed   :  { %1840 = vsyncpa [#allocation3 + $0x1], 1 }
 0xeee   :  { %1841 = vsyncpa [#allocation6], 1 }
 0xeef   :  { %1842 = vsyncpa [#allocation9], 1 }
 0xef0   :  { %1843 = vsyncpa [#allocation4], 1 }
 0xef1   :  { %1845 = vsyncpa [#allocation4 + $0x1], 1 }
 0xef2   :  { %1846 = vsyncpa [#allocation12], 1 }
 0xef3   :  { %1848 = vsyncpa [#allocation12 + $0x1], 1 }

</bundles_post_ra>
